<compile_context>
chip_gen: v7x
topology: tpu7x:2x2x1
jax: 0.10.0
libtpu: 0.0.40
codegen_flags: <defaults>
</compile_context>

<pallas_src>
from functools import partial

import numpy as np
import jax
import jax.numpy as jnp
from jax import lax
from jax.experimental import pallas as pl
from jax.experimental.pallas import tpu as pltpu


# dot_general dimension_numbers for `x @ w.T`: contract last dim of x with dim 1 of w,
# no batch dims.  Avoids materializing an operand transpose in the kernel.
_DN_XWT = (((1,), (1,)), ((), ()))


def _fused_ppf_attention_kernel(
    q_ref, k_ref, v_ref, e_ref,
    wq_ref, wk_ref, wv_ref, wg_ref,
    bq_ref, bk_ref, bv_ref, bg_ref,
    h_ref, s_ref,
    *, num_heads, scale,
):
    # q_ref: (N, B, C); k_ref/v_ref/e_ref: (M, B, C)
    # w*_ref: (C, C) in PyTorch nn.Linear layout (row = output feature); b*_ref: (1, C)
    # h_ref: (N, B, C); s_ref: (B, H, N, M)
    N, B, C = q_ref.shape
    H = num_heads
    d = C // H

    wq = wq_ref[...]
    wk = wk_ref[...]
    wv = wv_ref[...]
    wg = wg_ref[...]
    bq = bq_ref[...]                      # (1, C) broadcasts over rows
    bkg = bk_ref[...] + bg_ref[...]       # fused bias of the (k + g) projection
    bv = bv_ref[...]

    # TODO(synk): optional key_weights / key_masks / attention_factors paths
    # (all None in the default forward) are not fused into this kernel.

    for b in range(B):                    # B, H are tiny -> fully unrolled, no grid steps
        q_in = q_ref[:, b, :]             # (N, C)
        k_in = k_ref[:, b, :]             # (M, C)
        v_in = v_ref[:, b, :]             # (M, C)
        e_in = e_ref[:, b, :]             # (M, C)

        # Projections (x @ w.T + b) on the MXU, no explicit transposes.
        qp = lax.dot_general(q_in, wq, _DN_XWT,
                             preferred_element_type=jnp.float32) + bq           # (N, C)
        # Fused (k + g) projection: scores later need q@(k'+g').T == q@k'.T + q@g'.T.
        kg = (lax.dot_general(k_in, wk, _DN_XWT,
                              preferred_element_type=jnp.float32)
              + lax.dot_general(e_in, wg, _DN_XWT,
                                preferred_element_type=jnp.float32)
              + bkg)                                                             # (M, C)
        vp = lax.dot_general(v_in, wv, _DN_XWT,
                             preferred_element_type=jnp.float32) + bv            # (M, C)

        head_outs = []
        for h in range(H):
            lo, hi = h * d, (h + 1) * d
            q_h = qp[:, lo:hi]            # (N, d)
            kg_h = kg[:, lo:hi]           # (M, d)
            v_h = vp[:, lo:hi]            # (M, d)

            # Single score matmul per head (e-scores + p-scores fused algebraically).
            scores = lax.dot_general(q_h, kg_h, _DN_XWT,
                                     preferred_element_type=jnp.float32) * scale  # (N, M)

            m = jnp.max(scores, axis=-1, keepdims=True)
            ex = jnp.exp(scores - m)
            inv = 1.0 / jnp.sum(ex, axis=-1, keepdims=True)   # one reciprocal per row
            probs = ex * inv                                   # softmax over M

            s_ref[b, h] = probs                                # (N, M) block store
            head_outs.append(
                jnp.dot(probs, v_h, preferred_element_type=jnp.float32))  # (N, d)

        # One lane-dense (N, C) store per batch, directly in the final (N, B, C) layout.
        h_ref[:, b, :] = jnp.concatenate(head_outs, axis=-1)


def ppf_multihead_attention(query, key, value, embed_g, params, num_heads):
    """query: (N,B,C); key/value/embed_g: (M,B,C). Returns ((N,B,C), (B,H,N,M))."""
    N, B, C = query.shape
    M = key.shape[0]
    H = num_heads
    d = C // H
    scale = 1.0 / float(d) ** 0.5

    kernel = partial(_fused_ppf_attention_kernel, num_heads=H, scale=scale)

    hidden, scores = pl.pallas_call(
        kernel,
        out_shape=(
            jax.ShapeDtypeStruct((N, B, C), jnp.float32),
            jax.ShapeDtypeStruct((B, H, N, M), jnp.float32),
        ),
        grid=(1,),
        in_specs=[
            pl.BlockSpec((N, B, C), lambda i: (0, 0, 0)),   # query
            pl.BlockSpec((M, B, C), lambda i: (0, 0, 0)),   # key
            pl.BlockSpec((M, B, C), lambda i: (0, 0, 0)),   # value
            pl.BlockSpec((M, B, C), lambda i: (0, 0, 0)),   # embed_g
            pl.BlockSpec((C, C), lambda i: (0, 0)),         # wq
            pl.BlockSpec((C, C), lambda i: (0, 0)),         # wk
            pl.BlockSpec((C, C), lambda i: (0, 0)),         # wv
            pl.BlockSpec((C, C), lambda i: (0, 0)),         # wg
            pl.BlockSpec((1, C), lambda i: (0, 0)),         # bq
            pl.BlockSpec((1, C), lambda i: (0, 0)),         # bk
            pl.BlockSpec((1, C), lambda i: (0, 0)),         # bv
            pl.BlockSpec((1, C), lambda i: (0, 0)),         # bg
        ],
        out_specs=(
            pl.BlockSpec((N, B, C), lambda i: (0, 0, 0)),
            pl.BlockSpec((B, H, N, M), lambda i: (0, 0, 0, 0)),
        ),
        compiler_params=pltpu.CompilerParams(
            dimension_semantics=("arbitrary",),
        ),
    )(
        query, key, value, embed_g,
        params["wq"], params["wk"], params["wv"], params["wg"],
        params["bq"].reshape(1, C), params["bk"].reshape(1, C),
        params["bv"].reshape(1, C), params["bg"].reshape(1, C),
    )
    return hidden, scores


# ----------------------------- Pure-JAX reference -----------------------------------
def reference(query, key, value, embed_g, params, num_heads):
    N, B, C = query.shape
    M = key.shape[0]
    H = num_heads
    d = C // H

    def proj(x, w, b):
        L = x.shape[0]
        return (x @ w.T + b).reshape(L, B, H, d).transpose(1, 2, 0, 3)

    q = proj(query, params["wq"], params["bq"])
    k = proj(key, params["wk"], params["bk"])
    v = proj(value, params["wv"], params["bv"])
    g = proj(embed_g, params["wg"], params["bg"])

    scores = (
        jnp.einsum("bhnc,bhmc->bhnm", q, k) + jnp.einsum("bhnc,bhmc->bhnm", q, g)
    ) / (d ** 0.5)
    probs = jax.nn.softmax(scores, axis=-1)
    hidden = jnp.einsum("bhnm,bhmd->bhnd", probs, v)
    hidden = hidden.transpose(0, 2, 1, 3).reshape(B, N, C).transpose(1, 0, 2)
    return hidden, probs


# ----------------------------- Main ---------------------------------------------------
if __name__ == "__main__":
    # Small shapes: d_model=32, num_heads=4 (d=8), N=M=8 tokens, batch=2.
    N, M, B, C, H = 8, 8, 2, 32, 4

    key0 = jax.random.PRNGKey(0)
    ks = jax.random.split(key0, 12)

    init = lambda k, shape: (jax.random.normal(k, shape, jnp.float32) * 0.1)
    params = {
        "wq": init(ks[0], (C, C)), "bq": init(ks[1], (C,)),
        "wk": init(ks[2], (C, C)), "bk": init(ks[3], (C,)),
        "wv": init(ks[4], (C, C)), "bv": init(ks[5], (C,)),
        "wg": init(ks[6], (C, C)), "bg": init(ks[7], (C,)),
    }

    query = jax.random.normal(ks[8], (N, B, C), jnp.float32)
    key_in = jax.random.normal(ks[9], (M, B, C), jnp.float32)
    value = jax.random.normal(ks[10], (M, B, C), jnp.float32)
    embed_g = jax.random.normal(ks[11], (M, B, C), jnp.float32)

    hidden, scores = ppf_multihead_attention(query, key_in, value, embed_g, params, H)
    hidden = jax.block_until_ready(hidden)
    scores = jax.block_until_ready(scores)

    hidden_ref, scores_ref = reference(query, key_in, value, embed_g, params, H)

    np.testing.assert_allclose(np.asarray(hidden), np.asarray(hidden_ref),
                               rtol=1e-5, atol=1e-5)
    np.testing.assert_allclose(np.asarray(scores), np.asarray(scores_ref),
                               rtol=1e-5, atol=1e-5)
    assert hidden.shape == (N, B, C)
    assert scores.shape == (B, H, N, M)
    print("KERNEL_OK")
</pallas_src>

<mosaic_0001>
module attributes {stable_mosaic.version = 11 : i64} {
  func.func @_fused_ppf_attention_kernel(%arg0: i32, %arg1: memref<8x2x32xf32, #tpu.memory_space<vmem>>, %arg2: memref<8x2x32xf32, #tpu.memory_space<vmem>>, %arg3: memref<8x2x32xf32, #tpu.memory_space<vmem>>, %arg4: memref<8x2x32xf32, #tpu.memory_space<vmem>>, %arg5: memref<32x32xf32, #tpu.memory_space<vmem>>, %arg6: memref<32x32xf32, #tpu.memory_space<vmem>>, %arg7: memref<32x32xf32, #tpu.memory_space<vmem>>, %arg8: memref<32x32xf32, #tpu.memory_space<vmem>>, %arg9: memref<1x32xf32, #tpu.memory_space<vmem>>, %arg10: memref<1x32xf32, #tpu.memory_space<vmem>>, %arg11: memref<1x32xf32, #tpu.memory_space<vmem>>, %arg12: memref<1x32xf32, #tpu.memory_space<vmem>>, %arg13: memref<8x2x32xf32, #tpu.memory_space<vmem>>, %arg14: memref<2x4x8x8xf32, #tpu.memory_space<vmem>>) attributes {dimension_semantics = [#tpu.dimension_semantics<arbitrary>], iteration_bounds = array<i64: 1>, scalar_prefetch = 0 : i64, scratch_operands = 0 : i64, tpu.core_type = #tpu.core_type<tc>, window_params = [{pipeline_mode = #tpu.pipeline_mode<synchronous>, transform_indices = @transform_0, window_bounds = array<i64: 8, 2, 32>}, {pipeline_mode = #tpu.pipeline_mode<synchronous>, transform_indices = @transform_1, window_bounds = array<i64: 8, 2, 32>}, {pipeline_mode = #tpu.pipeline_mode<synchronous>, transform_indices = @transform_2, window_bounds = array<i64: 8, 2, 32>}, {pipeline_mode = #tpu.pipeline_mode<synchronous>, transform_indices = @transform_3, window_bounds = array<i64: 8, 2, 32>}, {pipeline_mode = #tpu.pipeline_mode<synchronous>, transform_indices = @transform_4, window_bounds = array<i64: 32, 32>}, {pipeline_mode = #tpu.pipeline_mode<synchronous>, transform_indices = @transform_5, window_bounds = array<i64: 32, 32>}, {pipeline_mode = #tpu.pipeline_mode<synchronous>, transform_indices = @transform_6, window_bounds = array<i64: 32, 32>}, {pipeline_mode = #tpu.pipeline_mode<synchronous>, transform_indices = @transform_7, window_bounds = array<i64: 32, 32>}, {pipeline_mode = #tpu.pipeline_mode<synchronous>, transform_indices = @transform_8, window_bounds = array<i64: 1, 32>}, {pipeline_mode = #tpu.pipeline_mode<synchronous>, transform_indices = @transform_9, window_bounds = array<i64: 1, 32>}, {pipeline_mode = #tpu.pipeline_mode<synchronous>, transform_indices = @transform_10, window_bounds = array<i64: 1, 32>}, {pipeline_mode = #tpu.pipeline_mode<synchronous>, transform_indices = @transform_11, window_bounds = array<i64: 1, 32>}, {pipeline_mode = #tpu.pipeline_mode<synchronous>, transform_indices = @transform_12, window_bounds = array<i64: 8, 2, 32>}, {pipeline_mode = #tpu.pipeline_mode<synchronous>, transform_indices = @transform_13, window_bounds = array<i64: 2, 4, 8, 8>}]} {
    %c0 = arith.constant 0 : index
    %c0_0 = arith.constant 0 : index
    %0 = vector.load %arg5[%c0, %c0_0] : memref<32x32xf32, #tpu.memory_space<vmem>>, vector<32x32xf32>
    %c0_1 = arith.constant 0 : index
    %c0_2 = arith.constant 0 : index
    %1 = vector.load %arg6[%c0_1, %c0_2] : memref<32x32xf32, #tpu.memory_space<vmem>>, vector<32x32xf32>
    %c0_3 = arith.constant 0 : index
    %c0_4 = arith.constant 0 : index
    %2 = vector.load %arg7[%c0_3, %c0_4] : memref<32x32xf32, #tpu.memory_space<vmem>>, vector<32x32xf32>
    %c0_5 = arith.constant 0 : index
    %c0_6 = arith.constant 0 : index
    %3 = vector.load %arg8[%c0_5, %c0_6] : memref<32x32xf32, #tpu.memory_space<vmem>>, vector<32x32xf32>
    %c0_7 = arith.constant 0 : index
    %c0_8 = arith.constant 0 : index
    %4 = vector.load %arg9[%c0_7, %c0_8] : memref<1x32xf32, #tpu.memory_space<vmem>>, vector<1x32xf32>
    %c0_9 = arith.constant 0 : index
    %c0_10 = arith.constant 0 : index
    %5 = vector.load %arg10[%c0_9, %c0_10] : memref<1x32xf32, #tpu.memory_space<vmem>>, vector<1x32xf32>
    %c0_11 = arith.constant 0 : index
    %c0_12 = arith.constant 0 : index
    %6 = vector.load %arg12[%c0_11, %c0_12] : memref<1x32xf32, #tpu.memory_space<vmem>>, vector<1x32xf32>
    %7 = arith.addf %5, %6 : vector<1x32xf32>
    %c0_13 = arith.constant 0 : index
    %c0_14 = arith.constant 0 : index
    %8 = vector.load %arg11[%c0_13, %c0_14] : memref<1x32xf32, #tpu.memory_space<vmem>>, vector<1x32xf32>
    %c0_15 = arith.constant 0 : index
    %c0_16 = arith.constant 0 : index
    %c0_17 = arith.constant 0 : index
    %9 = vector.load %arg1[%c0_15, %c0_16, %c0_17] : memref<8x2x32xf32, #tpu.memory_space<vmem>>, vector<8x1x32xf32>
    %10 = vector.shape_cast %9 : vector<8x1x32xf32> to vector<8x32xf32>
    %c0_18 = arith.constant 0 : index
    %c0_19 = arith.constant 0 : index
    %c0_20 = arith.constant 0 : index
    %11 = vector.load %arg2[%c0_18, %c0_19, %c0_20] : memref<8x2x32xf32, #tpu.memory_space<vmem>>, vector<8x1x32xf32>
    %12 = vector.shape_cast %11 : vector<8x1x32xf32> to vector<8x32xf32>
    %c0_21 = arith.constant 0 : index
    %c0_22 = arith.constant 0 : index
    %c0_23 = arith.constant 0 : index
    %13 = vector.load %arg3[%c0_21, %c0_22, %c0_23] : memref<8x2x32xf32, #tpu.memory_space<vmem>>, vector<8x1x32xf32>
    %14 = vector.shape_cast %13 : vector<8x1x32xf32> to vector<8x32xf32>
    %c0_24 = arith.constant 0 : index
    %c0_25 = arith.constant 0 : index
    %c0_26 = arith.constant 0 : index
    %15 = vector.load %arg4[%c0_24, %c0_25, %c0_26] : memref<8x2x32xf32, #tpu.memory_space<vmem>>, vector<8x1x32xf32>
    %16 = vector.shape_cast %15 : vector<8x1x32xf32> to vector<8x32xf32>
    %cst = arith.constant dense<0.000000e+00> : vector<8x32xf32>
    %17 = tpu.matmul %10, %0, %cst {dimension_numbers = #tpu.dot_dimension_numbers<[1], [1], [0], [0], [0, 0, 1, 0], [], []>} : vector<8x32xf32>, vector<32x32xf32>, vector<8x32xf32> -> vector<8x32xf32>
    %18 = vector.broadcast %4 : vector<1x32xf32> to vector<8x32xf32>
    %19 = arith.addf %17, %18 : vector<8x32xf32>
    %cst_27 = arith.constant dense<0.000000e+00> : vector<8x32xf32>
    %20 = tpu.matmul %12, %1, %cst_27 {dimension_numbers = #tpu.dot_dimension_numbers<[1], [1], [0], [0], [0, 0, 1, 0], [], []>} : vector<8x32xf32>, vector<32x32xf32>, vector<8x32xf32> -> vector<8x32xf32>
    %cst_28 = arith.constant dense<0.000000e+00> : vector<8x32xf32>
    %21 = tpu.matmul %16, %3, %cst_28 {dimension_numbers = #tpu.dot_dimension_numbers<[1], [1], [0], [0], [0, 0, 1, 0], [], []>} : vector<8x32xf32>, vector<32x32xf32>, vector<8x32xf32> -> vector<8x32xf32>
    %22 = arith.addf %20, %21 : vector<8x32xf32>
    %23 = vector.broadcast %7 : vector<1x32xf32> to vector<8x32xf32>
    %24 = arith.addf %22, %23 : vector<8x32xf32>
    %cst_29 = arith.constant dense<0.000000e+00> : vector<8x32xf32>
    %25 = tpu.matmul %14, %2, %cst_29 {dimension_numbers = #tpu.dot_dimension_numbers<[1], [1], [0], [0], [0, 0, 1, 0], [], []>} : vector<8x32xf32>, vector<32x32xf32>, vector<8x32xf32> -> vector<8x32xf32>
    %26 = vector.broadcast %8 : vector<1x32xf32> to vector<8x32xf32>
    %27 = arith.addf %25, %26 : vector<8x32xf32>
    %28 = vector.extract_strided_slice %19 {offsets = [0, 0], sizes = [8, 8], strides = [1, 1]} : vector<8x32xf32> to vector<8x8xf32>
    %29 = vector.extract_strided_slice %24 {offsets = [0, 0], sizes = [8, 8], strides = [1, 1]} : vector<8x32xf32> to vector<8x8xf32>
    %30 = vector.extract_strided_slice %27 {offsets = [0, 0], sizes = [8, 8], strides = [1, 1]} : vector<8x32xf32> to vector<8x8xf32>
    %cst_30 = arith.constant dense<0.000000e+00> : vector<8x8xf32>
    %31 = tpu.matmul %28, %29, %cst_30 {dimension_numbers = #tpu.dot_dimension_numbers<[1], [1], [0], [0], [0, 0, 1, 0], [], []>} : vector<8x8xf32>, vector<8x8xf32>, vector<8x8xf32> -> vector<8x8xf32>
    %cst_31 = arith.constant 0.353553385 : f32
    %32 = vector.broadcast %cst_31 : f32 to vector<8x8xf32>
    %33 = arith.mulf %31, %32 : vector<8x8xf32>
    %cst_32 = arith.constant dense<0xFF800000> : vector<8xf32>
    %34 = vector.multi_reduction <maximumf>, %33, %cst_32 [1] : vector<8x8xf32> to vector<8xf32>
    %35 = vector.shape_cast %34 : vector<8xf32> to vector<8x1xf32>
    %36 = vector.broadcast %35 : vector<8x1xf32> to vector<8x8xf32>
    %37 = arith.subf %33, %36 : vector<8x8xf32>
    %38 = math.exp %37 : vector<8x8xf32>
    %cst_33 = arith.constant dense<0.000000e+00> : vector<8xf32>
    %39 = vector.multi_reduction <add>, %38, %cst_33 [1] : vector<8x8xf32> to vector<8xf32>
    %40 = vector.shape_cast %39 : vector<8xf32> to vector<8x1xf32>
    %cst_34 = arith.constant 1.000000e+00 : f32
    %41 = vector.broadcast %cst_34 : f32 to vector<8x1xf32>
    %42 = arith.divf %41, %40 : vector<8x1xf32>
    %43 = vector.broadcast %42 : vector<8x1xf32> to vector<8x8xf32>
    %44 = arith.mulf %38, %43 : vector<8x8xf32>
    %c0_35 = arith.constant 0 : index
    %c0_36 = arith.constant 0 : index
    %c0_37 = arith.constant 0 : index
    %c0_38 = arith.constant 0 : index
    %45 = vector.load %arg14[%c0_35, %c0_36, %c0_37, %c0_38] : memref<2x4x8x8xf32, #tpu.memory_space<vmem>>, vector<1x1x8x8xf32>
    %46 = vector.shape_cast %45 : vector<1x1x8x8xf32> to vector<8x8xf32>
    %47 = vector.shape_cast %44 : vector<8x8xf32> to vector<1x1x8x8xf32>
    tpu.vector_store %arg14[%c0_35, %c0_36, %c0_37, %c0_38], %47 {strides = array<i32>} : memref<2x4x8x8xf32, #tpu.memory_space<vmem>>, vector<1x1x8x8xf32>,
    %cst_39 = arith.constant dense<0.000000e+00> : vector<8x8xf32>
    %48 = tpu.matmul %44, %30, %cst_39 {dimension_numbers = #tpu.dot_dimension_numbers<[1], [0], [0], [1], [0, 0, 1, 1], [], []>} : vector<8x8xf32>, vector<8x8xf32>, vector<8x8xf32> -> vector<8x8xf32>
    %49 = vector.extract_strided_slice %19 {offsets = [0, 8], sizes = [8, 8], strides = [1, 1]} : vector<8x32xf32> to vector<8x8xf32>
    %50 = vector.extract_strided_slice %24 {offsets = [0, 8], sizes = [8, 8], strides = [1, 1]} : vector<8x32xf32> to vector<8x8xf32>
    %51 = vector.extract_strided_slice %27 {offsets = [0, 8], sizes = [8, 8], strides = [1, 1]} : vector<8x32xf32> to vector<8x8xf32>
    %cst_40 = arith.constant dense<0.000000e+00> : vector<8x8xf32>
    %52 = tpu.matmul %49, %50, %cst_40 {dimension_numbers = #tpu.dot_dimension_numbers<[1], [1], [0], [0], [0, 0, 1, 0], [], []>} : vector<8x8xf32>, vector<8x8xf32>, vector<8x8xf32> -> vector<8x8xf32>
    %cst_41 = arith.constant 0.353553385 : f32
    %53 = vector.broadcast %cst_41 : f32 to vector<8x8xf32>
    %54 = arith.mulf %52, %53 : vector<8x8xf32>
    %cst_42 = arith.constant dense<0xFF800000> : vector<8xf32>
    %55 = vector.multi_reduction <maximumf>, %54, %cst_42 [1] : vector<8x8xf32> to vector<8xf32>
    %56 = vector.shape_cast %55 : vector<8xf32> to vector<8x1xf32>
    %57 = vector.broadcast %56 : vector<8x1xf32> to vector<8x8xf32>
    %58 = arith.subf %54, %57 : vector<8x8xf32>
    %59 = math.exp %58 : vector<8x8xf32>
    %cst_43 = arith.constant dense<0.000000e+00> : vector<8xf32>
    %60 = vector.multi_reduction <add>, %59, %cst_43 [1] : vector<8x8xf32> to vector<8xf32>
    %61 = vector.shape_cast %60 : vector<8xf32> to vector<8x1xf32>
    %cst_44 = arith.constant 1.000000e+00 : f32
    %62 = vector.broadcast %cst_44 : f32 to vector<8x1xf32>
    %63 = arith.divf %62, %61 : vector<8x1xf32>
    %64 = vector.broadcast %63 : vector<8x1xf32> to vector<8x8xf32>
    %65 = arith.mulf %59, %64 : vector<8x8xf32>
    %c0_45 = arith.constant 0 : index
    %c1 = arith.constant 1 : index
    %c0_46 = arith.constant 0 : index
    %c0_47 = arith.constant 0 : index
    %66 = vector.load %arg14[%c0_45, %c1, %c0_46, %c0_47] : memref<2x4x8x8xf32, #tpu.memory_space<vmem>>, vector<1x1x8x8xf32>
    %67 = vector.shape_cast %66 : vector<1x1x8x8xf32> to vector<8x8xf32>
    %68 = vector.shape_cast %65 : vector<8x8xf32> to vector<1x1x8x8xf32>
    tpu.vector_store %arg14[%c0_45, %c1, %c0_46, %c0_47], %68 {strides = array<i32>} : memref<2x4x8x8xf32, #tpu.memory_space<vmem>>, vector<1x1x8x8xf32>,
    %cst_48 = arith.constant dense<0.000000e+00> : vector<8x8xf32>
    %69 = tpu.matmul %65, %51, %cst_48 {dimension_numbers = #tpu.dot_dimension_numbers<[1], [0], [0], [1], [0, 0, 1, 1], [], []>} : vector<8x8xf32>, vector<8x8xf32>, vector<8x8xf32> -> vector<8x8xf32>
    %70 = vector.extract_strided_slice %19 {offsets = [0, 16], sizes = [8, 8], strides = [1, 1]} : vector<8x32xf32> to vector<8x8xf32>
    %71 = vector.extract_strided_slice %24 {offsets = [0, 16], sizes = [8, 8], strides = [1, 1]} : vector<8x32xf32> to vector<8x8xf32>
    %72 = vector.extract_strided_slice %27 {offsets = [0, 16], sizes = [8, 8], strides = [1, 1]} : vector<8x32xf32> to vector<8x8xf32>
    %cst_49 = arith.constant dense<0.000000e+00> : vector<8x8xf32>
    %73 = tpu.matmul %70, %71, %cst_49 {dimension_numbers = #tpu.dot_dimension_numbers<[1], [1], [0], [0], [0, 0, 1, 0], [], []>} : vector<8x8xf32>, vector<8x8xf32>, vector<8x8xf32> -> vector<8x8xf32>
    %cst_50 = arith.constant 0.353553385 : f32
    %74 = vector.broadcast %cst_50 : f32 to vector<8x8xf32>
    %75 = arith.mulf %73, %74 : vector<8x8xf32>
    %cst_51 = arith.constant dense<0xFF800000> : vector<8xf32>
    %76 = vector.multi_reduction <maximumf>, %75, %cst_51 [1] : vector<8x8xf32> to vector<8xf32>
    %77 = vector.shape_cast %76 : vector<8xf32> to vector<8x1xf32>
    %78 = vector.broadcast %77 : vector<8x1xf32> to vector<8x8xf32>
    %79 = arith.subf %75, %78 : vector<8x8xf32>
    %80 = math.exp %79 : vector<8x8xf32>
    %cst_52 = arith.constant dense<0.000000e+00> : vector<8xf32>
    %81 = vector.multi_reduction <add>, %80, %cst_52 [1] : vector<8x8xf32> to vector<8xf32>
    %82 = vector.shape_cast %81 : vector<8xf32> to vector<8x1xf32>
    %cst_53 = arith.constant 1.000000e+00 : f32
    %83 = vector.broadcast %cst_53 : f32 to vector<8x1xf32>
    %84 = arith.divf %83, %82 : vector<8x1xf32>
    %85 = vector.broadcast %84 : vector<8x1xf32> to vector<8x8xf32>
    %86 = arith.mulf %80, %85 : vector<8x8xf32>
    %c0_54 = arith.constant 0 : index
    %c2 = arith.constant 2 : index
    %c0_55 = arith.constant 0 : index
    %c0_56 = arith.constant 0 : index
    %87 = vector.load %arg14[%c0_54, %c2, %c0_55, %c0_56] : memref<2x4x8x8xf32, #tpu.memory_space<vmem>>, vector<1x1x8x8xf32>
    %88 = vector.shape_cast %87 : vector<1x1x8x8xf32> to vector<8x8xf32>
    %89 = vector.shape_cast %86 : vector<8x8xf32> to vector<1x1x8x8xf32>
    tpu.vector_store %arg14[%c0_54, %c2, %c0_55, %c0_56], %89 {strides = array<i32>} : memref<2x4x8x8xf32, #tpu.memory_space<vmem>>, vector<1x1x8x8xf32>,
    %cst_57 = arith.constant dense<0.000000e+00> : vector<8x8xf32>
    %90 = tpu.matmul %86, %72, %cst_57 {dimension_numbers = #tpu.dot_dimension_numbers<[1], [0], [0], [1], [0, 0, 1, 1], [], []>} : vector<8x8xf32>, vector<8x8xf32>, vector<8x8xf32> -> vector<8x8xf32>
    %91 = vector.extract_strided_slice %19 {offsets = [0, 24], sizes = [8, 8], strides = [1, 1]} : vector<8x32xf32> to vector<8x8xf32>
    %92 = vector.extract_strided_slice %24 {offsets = [0, 24], sizes = [8, 8], strides = [1, 1]} : vector<8x32xf32> to vector<8x8xf32>
    %93 = vector.extract_strided_slice %27 {offsets = [0, 24], sizes = [8, 8], strides = [1, 1]} : vector<8x32xf32> to vector<8x8xf32>
    %cst_58 = arith.constant dense<0.000000e+00> : vector<8x8xf32>
    %94 = tpu.matmul %91, %92, %cst_58 {dimension_numbers = #tpu.dot_dimension_numbers<[1], [1], [0], [0], [0, 0, 1, 0], [], []>} : vector<8x8xf32>, vector<8x8xf32>, vector<8x8xf32> -> vector<8x8xf32>
    %cst_59 = arith.constant 0.353553385 : f32
    %95 = vector.broadcast %cst_59 : f32 to vector<8x8xf32>
    %96 = arith.mulf %94, %95 : vector<8x8xf32>
    %cst_60 = arith.constant dense<0xFF800000> : vector<8xf32>
    %97 = vector.multi_reduction <maximumf>, %96, %cst_60 [1] : vector<8x8xf32> to vector<8xf32>
    %98 = vector.shape_cast %97 : vector<8xf32> to vector<8x1xf32>
    %99 = vector.broadcast %98 : vector<8x1xf32> to vector<8x8xf32>
    %100 = arith.subf %96, %99 : vector<8x8xf32>
    %101 = math.exp %100 : vector<8x8xf32>
    %cst_61 = arith.constant dense<0.000000e+00> : vector<8xf32>
    %102 = vector.multi_reduction <add>, %101, %cst_61 [1] : vector<8x8xf32> to vector<8xf32>
    %103 = vector.shape_cast %102 : vector<8xf32> to vector<8x1xf32>
    %cst_62 = arith.constant 1.000000e+00 : f32
    %104 = vector.broadcast %cst_62 : f32 to vector<8x1xf32>
    %105 = arith.divf %104, %103 : vector<8x1xf32>
    %106 = vector.broadcast %105 : vector<8x1xf32> to vector<8x8xf32>
    %107 = arith.mulf %101, %106 : vector<8x8xf32>
    %c0_63 = arith.constant 0 : index
    %c3 = arith.constant 3 : index
    %c0_64 = arith.constant 0 : index
    %c0_65 = arith.constant 0 : index
    %108 = vector.load %arg14[%c0_63, %c3, %c0_64, %c0_65] : memref<2x4x8x8xf32, #tpu.memory_space<vmem>>, vector<1x1x8x8xf32>
    %109 = vector.shape_cast %108 : vector<1x1x8x8xf32> to vector<8x8xf32>
    %110 = vector.shape_cast %107 : vector<8x8xf32> to vector<1x1x8x8xf32>
    tpu.vector_store %arg14[%c0_63, %c3, %c0_64, %c0_65], %110 {strides = array<i32>} : memref<2x4x8x8xf32, #tpu.memory_space<vmem>>, vector<1x1x8x8xf32>,
    %cst_66 = arith.constant dense<0.000000e+00> : vector<8x8xf32>
    %111 = tpu.matmul %107, %93, %cst_66 {dimension_numbers = #tpu.dot_dimension_numbers<[1], [0], [0], [1], [0, 0, 1, 1], [], []>} : vector<8x8xf32>, vector<8x8xf32>, vector<8x8xf32> -> vector<8x8xf32>
    %112 = tpu.concatenate %48, %69, %90, %111 in 1 : vector<8x8xf32>, vector<8x8xf32>, vector<8x8xf32>, vector<8x8xf32> -> vector<8x32xf32>
    %c0_67 = arith.constant 0 : index
    %c0_68 = arith.constant 0 : index
    %c0_69 = arith.constant 0 : index
    %113 = vector.load %arg13[%c0_67, %c0_68, %c0_69] : memref<8x2x32xf32, #tpu.memory_space<vmem>>, vector<8x1x32xf32>
    %114 = vector.shape_cast %113 : vector<8x1x32xf32> to vector<8x32xf32>
    %115 = vector.shape_cast %112 : vector<8x32xf32> to vector<8x1x32xf32>
    tpu.vector_store %arg13[%c0_67, %c0_68, %c0_69], %115 {strides = array<i32>} : memref<8x2x32xf32, #tpu.memory_space<vmem>>, vector<8x1x32xf32>,
    %c0_70 = arith.constant 0 : index
    %c1_71 = arith.constant 1 : index
    %c0_72 = arith.constant 0 : index
    %116 = vector.load %arg1[%c0_70, %c1_71, %c0_72] : memref<8x2x32xf32, #tpu.memory_space<vmem>>, vector<8x1x32xf32>
    %117 = vector.shape_cast %116 : vector<8x1x32xf32> to vector<8x32xf32>
    %c0_73 = arith.constant 0 : index
    %c1_74 = arith.constant 1 : index
    %c0_75 = arith.constant 0 : index
    %118 = vector.load %arg2[%c0_73, %c1_74, %c0_75] : memref<8x2x32xf32, #tpu.memory_space<vmem>>, vector<8x1x32xf32>
    %119 = vector.shape_cast %118 : vector<8x1x32xf32> to vector<8x32xf32>
    %c0_76 = arith.constant 0 : index
    %c1_77 = arith.constant 1 : index
    %c0_78 = arith.constant 0 : index
    %120 = vector.load %arg3[%c0_76, %c1_77, %c0_78] : memref<8x2x32xf32, #tpu.memory_space<vmem>>, vector<8x1x32xf32>
    %121 = vector.shape_cast %120 : vector<8x1x32xf32> to vector<8x32xf32>
    %c0_79 = arith.constant 0 : index
    %c1_80 = arith.constant 1 : index
    %c0_81 = arith.constant 0 : index
    %122 = vector.load %arg4[%c0_79, %c1_80, %c0_81] : memref<8x2x32xf32, #tpu.memory_space<vmem>>, vector<8x1x32xf32>
    %123 = vector.shape_cast %122 : vector<8x1x32xf32> to vector<8x32xf32>
    %cst_82 = arith.constant dense<0.000000e+00> : vector<8x32xf32>
    %124 = tpu.matmul %117, %0, %cst_82 {dimension_numbers = #tpu.dot_dimension_numbers<[1], [1], [0], [0], [0, 0, 1, 0], [], []>} : vector<8x32xf32>, vector<32x32xf32>, vector<8x32xf32> -> vector<8x32xf32>
    %125 = vector.broadcast %4 : vector<1x32xf32> to vector<8x32xf32>
    %126 = arith.addf %124, %125 : vector<8x32xf32>
    %cst_83 = arith.constant dense<0.000000e+00> : vector<8x32xf32>
    %127 = tpu.matmul %119, %1, %cst_83 {dimension_numbers = #tpu.dot_dimension_numbers<[1], [1], [0], [0], [0, 0, 1, 0], [], []>} : vector<8x32xf32>, vector<32x32xf32>, vector<8x32xf32> -> vector<8x32xf32>
    %cst_84 = arith.constant dense<0.000000e+00> : vector<8x32xf32>
    %128 = tpu.matmul %123, %3, %cst_84 {dimension_numbers = #tpu.dot_dimension_numbers<[1], [1], [0], [0], [0, 0, 1, 0], [], []>} : vector<8x32xf32>, vector<32x32xf32>, vector<8x32xf32> -> vector<8x32xf32>
    %129 = arith.addf %127, %128 : vector<8x32xf32>
    %130 = vector.broadcast %7 : vector<1x32xf32> to vector<8x32xf32>
    %131 = arith.addf %129, %130 : vector<8x32xf32>
    %cst_85 = arith.constant dense<0.000000e+00> : vector<8x32xf32>
    %132 = tpu.matmul %121, %2, %cst_85 {dimension_numbers = #tpu.dot_dimension_numbers<[1], [1], [0], [0], [0, 0, 1, 0], [], []>} : vector<8x32xf32>, vector<32x32xf32>, vector<8x32xf32> -> vector<8x32xf32>
    %133 = vector.broadcast %8 : vector<1x32xf32> to vector<8x32xf32>
    %134 = arith.addf %132, %133 : vector<8x32xf32>
    %135 = vector.extract_strided_slice %126 {offsets = [0, 0], sizes = [8, 8], strides = [1, 1]} : vector<8x32xf32> to vector<8x8xf32>
    %136 = vector.extract_strided_slice %131 {offsets = [0, 0], sizes = [8, 8], strides = [1, 1]} : vector<8x32xf32> to vector<8x8xf32>
    %137 = vector.extract_strided_slice %134 {offsets = [0, 0], sizes = [8, 8], strides = [1, 1]} : vector<8x32xf32> to vector<8x8xf32>
    %cst_86 = arith.constant dense<0.000000e+00> : vector<8x8xf32>
    %138 = tpu.matmul %135, %136, %cst_86 {dimension_numbers = #tpu.dot_dimension_numbers<[1], [1], [0], [0], [0, 0, 1, 0], [], []>} : vector<8x8xf32>, vector<8x8xf32>, vector<8x8xf32> -> vector<8x8xf32>
    %cst_87 = arith.constant 0.353553385 : f32
    %139 = vector.broadcast %cst_87 : f32 to vector<8x8xf32>
    %140 = arith.mulf %138, %139 : vector<8x8xf32>
    %cst_88 = arith.constant dense<0xFF800000> : vector<8xf32>
    %141 = vector.multi_reduction <maximumf>, %140, %cst_88 [1] : vector<8x8xf32> to vector<8xf32>
    %142 = vector.shape_cast %141 : vector<8xf32> to vector<8x1xf32>
    %143 = vector.broadcast %142 : vector<8x1xf32> to vector<8x8xf32>
    %144 = arith.subf %140, %143 : vector<8x8xf32>
    %145 = math.exp %144 : vector<8x8xf32>
    %cst_89 = arith.constant dense<0.000000e+00> : vector<8xf32>
    %146 = vector.multi_reduction <add>, %145, %cst_89 [1] : vector<8x8xf32> to vector<8xf32>
    %147 = vector.shape_cast %146 : vector<8xf32> to vector<8x1xf32>
    %cst_90 = arith.constant 1.000000e+00 : f32
    %148 = vector.broadcast %cst_90 : f32 to vector<8x1xf32>
    %149 = arith.divf %148, %147 : vector<8x1xf32>
    %150 = vector.broadcast %149 : vector<8x1xf32> to vector<8x8xf32>
    %151 = arith.mulf %145, %150 : vector<8x8xf32>
    %c1_91 = arith.constant 1 : index
    %c0_92 = arith.constant 0 : index
    %c0_93 = arith.constant 0 : index
    %c0_94 = arith.constant 0 : index
    %152 = vector.load %arg14[%c1_91, %c0_92, %c0_93, %c0_94] : memref<2x4x8x8xf32, #tpu.memory_space<vmem>>, vector<1x1x8x8xf32>
    %153 = vector.shape_cast %152 : vector<1x1x8x8xf32> to vector<8x8xf32>
    %154 = vector.shape_cast %151 : vector<8x8xf32> to vector<1x1x8x8xf32>
    tpu.vector_store %arg14[%c1_91, %c0_92, %c0_93, %c0_94], %154 {strides = array<i32>} : memref<2x4x8x8xf32, #tpu.memory_space<vmem>>, vector<1x1x8x8xf32>,
    %cst_95 = arith.constant dense<0.000000e+00> : vector<8x8xf32>
    %155 = tpu.matmul %151, %137, %cst_95 {dimension_numbers = #tpu.dot_dimension_numbers<[1], [0], [0], [1], [0, 0, 1, 1], [], []>} : vector<8x8xf32>, vector<8x8xf32>, vector<8x8xf32> -> vector<8x8xf32>
    %156 = vector.extract_strided_slice %126 {offsets = [0, 8], sizes = [8, 8], strides = [1, 1]} : vector<8x32xf32> to vector<8x8xf32>
    %157 = vector.extract_strided_slice %131 {offsets = [0, 8], sizes = [8, 8], strides = [1, 1]} : vector<8x32xf32> to vector<8x8xf32>
    %158 = vector.extract_strided_slice %134 {offsets = [0, 8], sizes = [8, 8], strides = [1, 1]} : vector<8x32xf32> to vector<8x8xf32>
    %cst_96 = arith.constant dense<0.000000e+00> : vector<8x8xf32>
    %159 = tpu.matmul %156, %157, %cst_96 {dimension_numbers = #tpu.dot_dimension_numbers<[1], [1], [0], [0], [0, 0, 1, 0], [], []>} : vector<8x8xf32>, vector<8x8xf32>, vector<8x8xf32> -> vector<8x8xf32>
    %cst_97 = arith.constant 0.353553385 : f32
    %160 = vector.broadcast %cst_97 : f32 to vector<8x8xf32>
    %161 = arith.mulf %159, %160 : vector<8x8xf32>
    %cst_98 = arith.constant dense<0xFF800000> : vector<8xf32>
    %162 = vector.multi_reduction <maximumf>, %161, %cst_98 [1] : vector<8x8xf32> to vector<8xf32>
    %163 = vector.shape_cast %162 : vector<8xf32> to vector<8x1xf32>
    %164 = vector.broadcast %163 : vector<8x1xf32> to vector<8x8xf32>
    %165 = arith.subf %161, %164 : vector<8x8xf32>
    %166 = math.exp %165 : vector<8x8xf32>
    %cst_99 = arith.constant dense<0.000000e+00> : vector<8xf32>
    %167 = vector.multi_reduction <add>, %166, %cst_99 [1] : vector<8x8xf32> to vector<8xf32>
    %168 = vector.shape_cast %167 : vector<8xf32> to vector<8x1xf32>
    %cst_100 = arith.constant 1.000000e+00 : f32
    %169 = vector.broadcast %cst_100 : f32 to vector<8x1xf32>
    %170 = arith.divf %169, %168 : vector<8x1xf32>
    %171 = vector.broadcast %170 : vector<8x1xf32> to vector<8x8xf32>
    %172 = arith.mulf %166, %171 : vector<8x8xf32>
    %c1_101 = arith.constant 1 : index
    %c1_102 = arith.constant 1 : index
    %c0_103 = arith.constant 0 : index
    %c0_104 = arith.constant 0 : index
    %173 = vector.load %arg14[%c1_101, %c1_102, %c0_103, %c0_104] : memref<2x4x8x8xf32, #tpu.memory_space<vmem>>, vector<1x1x8x8xf32>
    %174 = vector.shape_cast %173 : vector<1x1x8x8xf32> to vector<8x8xf32>
    %175 = vector.shape_cast %172 : vector<8x8xf32> to vector<1x1x8x8xf32>
    tpu.vector_store %arg14[%c1_101, %c1_102, %c0_103, %c0_104], %175 {strides = array<i32>} : memref<2x4x8x8xf32, #tpu.memory_space<vmem>>, vector<1x1x8x8xf32>,
    %cst_105 = arith.constant dense<0.000000e+00> : vector<8x8xf32>
    %176 = tpu.matmul %172, %158, %cst_105 {dimension_numbers = #tpu.dot_dimension_numbers<[1], [0], [0], [1], [0, 0, 1, 1], [], []>} : vector<8x8xf32>, vector<8x8xf32>, vector<8x8xf32> -> vector<8x8xf32>
    %177 = vector.extract_strided_slice %126 {offsets = [0, 16], sizes = [8, 8], strides = [1, 1]} : vector<8x32xf32> to vector<8x8xf32>
    %178 = vector.extract_strided_slice %131 {offsets = [0, 16], sizes = [8, 8], strides = [1, 1]} : vector<8x32xf32> to vector<8x8xf32>
    %179 = vector.extract_strided_slice %134 {offsets = [0, 16], sizes = [8, 8], strides = [1, 1]} : vector<8x32xf32> to vector<8x8xf32>
    %cst_106 = arith.constant dense<0.000000e+00> : vector<8x8xf32>
    %180 = tpu.matmul %177, %178, %cst_106 {dimension_numbers = #tpu.dot_dimension_numbers<[1], [1], [0], [0], [0, 0, 1, 0], [], []>} : vector<8x8xf32>, vector<8x8xf32>, vector<8x8xf32> -> vector<8x8xf32>
    %cst_107 = arith.constant 0.353553385 : f32
    %181 = vector.broadcast %cst_107 : f32 to vector<8x8xf32>
    %182 = arith.mulf %180, %181 : vector<8x8xf32>
    %cst_108 = arith.constant dense<0xFF800000> : vector<8xf32>
    %183 = vector.multi_reduction <maximumf>, %182, %cst_108 [1] : vector<8x8xf32> to vector<8xf32>
    %184 = vector.shape_cast %183 : vector<8xf32> to vector<8x1xf32>
    %185 = vector.broadcast %184 : vector<8x1xf32> to vector<8x8xf32>
    %186 = arith.subf %182, %185 : vector<8x8xf32>
    %187 = math.exp %186 : vector<8x8xf32>
    %cst_109 = arith.constant dense<0.000000e+00> : vector<8xf32>
    %188 = vector.multi_reduction <add>, %187, %cst_109 [1] : vector<8x8xf32> to vector<8xf32>
    %189 = vector.shape_cast %188 : vector<8xf32> to vector<8x1xf32>
    %cst_110 = arith.constant 1.000000e+00 : f32
    %190 = vector.broadcast %cst_110 : f32 to vector<8x1xf32>
    %191 = arith.divf %190, %189 : vector<8x1xf32>
    %192 = vector.broadcast %191 : vector<8x1xf32> to vector<8x8xf32>
    %193 = arith.mulf %187, %192 : vector<8x8xf32>
    %c1_111 = arith.constant 1 : index
    %c2_112 = arith.constant 2 : index
    %c0_113 = arith.constant 0 : index
    %c0_114 = arith.constant 0 : index
    %194 = vector.load %arg14[%c1_111, %c2_112, %c0_113, %c0_114] : memref<2x4x8x8xf32, #tpu.memory_space<vmem>>, vector<1x1x8x8xf32>
    %195 = vector.shape_cast %194 : vector<1x1x8x8xf32> to vector<8x8xf32>
    %196 = vector.shape_cast %193 : vector<8x8xf32> to vector<1x1x8x8xf32>
    tpu.vector_store %arg14[%c1_111, %c2_112, %c0_113, %c0_114], %196 {strides = array<i32>} : memref<2x4x8x8xf32, #tpu.memory_space<vmem>>, vector<1x1x8x8xf32>,
    %cst_115 = arith.constant dense<0.000000e+00> : vector<8x8xf32>
    %197 = tpu.matmul %193, %179, %cst_115 {dimension_numbers = #tpu.dot_dimension_numbers<[1], [0], [0], [1], [0, 0, 1, 1], [], []>} : vector<8x8xf32>, vector<8x8xf32>, vector<8x8xf32> -> vector<8x8xf32>
    %198 = vector.extract_strided_slice %126 {offsets = [0, 24], sizes = [8, 8], strides = [1, 1]} : vector<8x32xf32> to vector<8x8xf32>
    %199 = vector.extract_strided_slice %131 {offsets = [0, 24], sizes = [8, 8], strides = [1, 1]} : vector<8x32xf32> to vector<8x8xf32>
    %200 = vector.extract_strided_slice %134 {offsets = [0, 24], sizes = [8, 8], strides = [1, 1]} : vector<8x32xf32> to vector<8x8xf32>
    %cst_116 = arith.constant dense<0.000000e+00> : vector<8x8xf32>
    %201 = tpu.matmul %198, %199, %cst_116 {dimension_numbers = #tpu.dot_dimension_numbers<[1], [1], [0], [0], [0, 0, 1, 0], [], []>} : vector<8x8xf32>, vector<8x8xf32>, vector<8x8xf32> -> vector<8x8xf32>
    %cst_117 = arith.constant 0.353553385 : f32
    %202 = vector.broadcast %cst_117 : f32 to vector<8x8xf32>
    %203 = arith.mulf %201, %202 : vector<8x8xf32>
    %cst_118 = arith.constant dense<0xFF800000> : vector<8xf32>
    %204 = vector.multi_reduction <maximumf>, %203, %cst_118 [1] : vector<8x8xf32> to vector<8xf32>
    %205 = vector.shape_cast %204 : vector<8xf32> to vector<8x1xf32>
    %206 = vector.broadcast %205 : vector<8x1xf32> to vector<8x8xf32>
    %207 = arith.subf %203, %206 : vector<8x8xf32>
    %208 = math.exp %207 : vector<8x8xf32>
    %cst_119 = arith.constant dense<0.000000e+00> : vector<8xf32>
    %209 = vector.multi_reduction <add>, %208, %cst_119 [1] : vector<8x8xf32> to vector<8xf32>
    %210 = vector.shape_cast %209 : vector<8xf32> to vector<8x1xf32>
    %cst_120 = arith.constant 1.000000e+00 : f32
    %211 = vector.broadcast %cst_120 : f32 to vector<8x1xf32>
    %212 = arith.divf %211, %210 : vector<8x1xf32>
    %213 = vector.broadcast %212 : vector<8x1xf32> to vector<8x8xf32>
    %214 = arith.mulf %208, %213 : vector<8x8xf32>
    %c1_121 = arith.constant 1 : index
    %c3_122 = arith.constant 3 : index
    %c0_123 = arith.constant 0 : index
    %c0_124 = arith.constant 0 : index
    %215 = vector.load %arg14[%c1_121, %c3_122, %c0_123, %c0_124] : memref<2x4x8x8xf32, #tpu.memory_space<vmem>>, vector<1x1x8x8xf32>
    %216 = vector.shape_cast %215 : vector<1x1x8x8xf32> to vector<8x8xf32>
    %217 = vector.shape_cast %214 : vector<8x8xf32> to vector<1x1x8x8xf32>
    tpu.vector_store %arg14[%c1_121, %c3_122, %c0_123, %c0_124], %217 {strides = array<i32>} : memref<2x4x8x8xf32, #tpu.memory_space<vmem>>, vector<1x1x8x8xf32>,
    %cst_125 = arith.constant dense<0.000000e+00> : vector<8x8xf32>
    %218 = tpu.matmul %214, %200, %cst_125 {dimension_numbers = #tpu.dot_dimension_numbers<[1], [0], [0], [1], [0, 0, 1, 1], [], []>} : vector<8x8xf32>, vector<8x8xf32>, vector<8x8xf32> -> vector<8x8xf32>
    %219 = tpu.concatenate %155, %176, %197, %218 in 1 : vector<8x8xf32>, vector<8x8xf32>, vector<8x8xf32>, vector<8x8xf32> -> vector<8x32xf32>
    %c0_126 = arith.constant 0 : index
    %c1_127 = arith.constant 1 : index
    %c0_128 = arith.constant 0 : index
    %220 = vector.load %arg13[%c0_126, %c1_127, %c0_128] : memref<8x2x32xf32, #tpu.memory_space<vmem>>, vector<8x1x32xf32>
    %221 = vector.shape_cast %220 : vector<8x1x32xf32> to vector<8x32xf32>
    %222 = vector.shape_cast %219 : vector<8x32xf32> to vector<8x1x32xf32>
    tpu.vector_store %arg13[%c0_126, %c1_127, %c0_128], %222 {strides = array<i32>} : memref<8x2x32xf32, #tpu.memory_space<vmem>>, vector<8x1x32xf32>,
    return
  }
  func.func @transform_0(%arg0: i32) -> (i32, i32, i32) {
    %c0_i32 = arith.constant 0 : i32
    %c0_i32_0 = arith.constant 0 : i32
    %c0_i32_1 = arith.constant 0 : i32
    %c0_i32_2 = arith.constant 0 : i32
    return %c0_i32, %c0_i32_0, %c0_i32_1 : i32, i32, i32
  }
  func.func @transform_1(%arg0: i32) -> (i32, i32, i32) {
    %c0_i32 = arith.constant 0 : i32
    %c0_i32_0 = arith.constant 0 : i32
    %c0_i32_1 = arith.constant 0 : i32
    %c0_i32_2 = arith.constant 0 : i32
    return %c0_i32, %c0_i32_0, %c0_i32_1 : i32, i32, i32
  }
  func.func @transform_2(%arg0: i32) -> (i32, i32, i32) {
    %c0_i32 = arith.constant 0 : i32
    %c0_i32_0 = arith.constant 0 : i32
    %c0_i32_1 = arith.constant 0 : i32
    %c0_i32_2 = arith.constant 0 : i32
    return %c0_i32, %c0_i32_0, %c0_i32_1 : i32, i32, i32
  }
  func.func @transform_3(%arg0: i32) -> (i32, i32, i32) {
    %c0_i32 = arith.constant 0 : i32
    %c0_i32_0 = arith.constant 0 : i32
    %c0_i32_1 = arith.constant 0 : i32
    %c0_i32_2 = arith.constant 0 : i32
    return %c0_i32, %c0_i32_0, %c0_i32_1 : i32, i32, i32
  }
  func.func @transform_4(%arg0: i32) -> (i32, i32) {
    %c0_i32 = arith.constant 0 : i32
    %c0_i32_0 = arith.constant 0 : i32
    %c0_i32_1 = arith.constant 0 : i32
    return %c0_i32, %c0_i32_0 : i32, i32
  }
  func.func @transform_5(%arg0: i32) -> (i32, i32) {
    %c0_i32 = arith.constant 0 : i32
    %c0_i32_0 = arith.constant 0 : i32
    %c0_i32_1 = arith.constant 0 : i32
    return %c0_i32, %c0_i32_0 : i32, i32
  }
  func.func @transform_6(%arg0: i32) -> (i32, i32) {
    %c0_i32 = arith.constant 0 : i32
    %c0_i32_0 = arith.constant 0 : i32
    %c0_i32_1 = arith.constant 0 : i32
    return %c0_i32, %c0_i32_0 : i32, i32
  }
  func.func @transform_7(%arg0: i32) -> (i32, i32) {
    %c0_i32 = arith.constant 0 : i32
    %c0_i32_0 = arith.constant 0 : i32
    %c0_i32_1 = arith.constant 0 : i32
    return %c0_i32, %c0_i32_0 : i32, i32
  }
  func.func @transform_8(%arg0: i32) -> (i32, i32) {
    %c0_i32 = arith.constant 0 : i32
    %c0_i32_0 = arith.constant 0 : i32
    %c0_i32_1 = arith.constant 0 : i32
    return %c0_i32, %c0_i32_0 : i32, i32
  }
  func.func @transform_9(%arg0: i32) -> (i32, i32) {
    %c0_i32 = arith.constant 0 : i32
    %c0_i32_0 = arith.constant 0 : i32
    %c0_i32_1 = arith.constant 0 : i32
    return %c0_i32, %c0_i32_0 : i32, i32
  }
  func.func @transform_10(%arg0: i32) -> (i32, i32) {
    %c0_i32 = arith.constant 0 : i32
    %c0_i32_0 = arith.constant 0 : i32
    %c0_i32_1 = arith.constant 0 : i32
    return %c0_i32, %c0_i32_0 : i32, i32
  }
  func.func @transform_11(%arg0: i32) -> (i32, i32) {
    %c0_i32 = arith.constant 0 : i32
    %c0_i32_0 = arith.constant 0 : i32
    %c0_i32_1 = arith.constant 0 : i32
    return %c0_i32, %c0_i32_0 : i32, i32
  }
  func.func @transform_12(%arg0: i32) -> (i32, i32, i32) {
    %c0_i32 = arith.constant 0 : i32
    %c0_i32_0 = arith.constant 0 : i32
    %c0_i32_1 = arith.constant 0 : i32
    %c0_i32_2 = arith.constant 0 : i32
    return %c0_i32, %c0_i32_0, %c0_i32_1 : i32, i32, i32
  }
  func.func @transform_13(%arg0: i32) -> (i32, i32, i32, i32) {
    %c0_i32 = arith.constant 0 : i32
    %c0_i32_0 = arith.constant 0 : i32
    %c0_i32_1 = arith.constant 0 : i32
    %c0_i32_2 = arith.constant 0 : i32
    %c0_i32_3 = arith.constant 0 : i32
    return %c0_i32, %c0_i32_0, %c0_i32_1, %c0_i32_2 : i32, i32, i32, i32
  }
}

</mosaic_0001>

<bundles_post_ra>
// kernel: tpu_custom_call.1
= control target key start
LH: loop header
LB: loop body
LE: loop exit
PB: predicated region body
PF: predicated region fallthrough
CT: control target
= control target key end

     0   :  { %19 = vsyncpa [#allocation3], 0  ;;  %s3927_s0 = inlined_call_operand.hbm [shape: f32[8,2,32], index: 0, kind: input, shape index: {}]   ;;  %s3928_s1 = inlined_call_operand.hbm [shape: f32[8,2,32], index: 1, kind: input, shape index: {}]   ;;  %s3929_s2 = inlined_call_operand.hbm [shape: f32[8,2,32], index: 2, kind: input, shape index: {}]   ;;  %s3930_s3 = inlined_call_operand.hbm [shape: f32[8,2,32], index: 3, kind: input, shape index: {}]   ;;  %s3931_s4 = inlined_call_operand.hbm [shape: f32[32,32], index: 4, kind: input, shape index: {}]   ;;  %s3932_s5 = inlined_call_operand.hbm [shape: f32[32,32], index: 5, kind: input, shape index: {}]   ;;  %s3933_s6 = inlined_call_operand.hbm [shape: f32[32,32], index: 6, kind: input, shape index: {}]   ;;  %s3934_s7 = inlined_call_operand.hbm [shape: f32[32,32], index: 7, kind: input, shape index: {}]   ;;  %s3935_s8 = inlined_call_operand.vmem [shape: f32[1,32], index: 8, kind: input, shape index: {}]   ;;  %s3936_s9 = inlined_call_operand.vmem [shape: f32[1,32], index: 9, kind: input, shape index: {}]   ;;  %s3937_s10 = inlined_call_operand.vmem [shape: f32[1,32], index: 10, kind: input, shape index: {}]   ;;  %s3938_s11 = inlined_call_operand.vmem [shape: f32[1,32], index: 11, kind: input, shape index: {}]   ;;  %s3939_s12 = inlined_call_operand.hbm [shape: f32[8,2,32], index: 12, kind: output, shape index: {0}]   ;;  %s3940_s13 = inlined_call_operand.hbm [shape: f32[2,4,8,8], index: 13, kind: output, shape index: {1}]  }
   0x1   :  { %20 = vsyncpa [#allocation6], 0 }
   0x2   :  { %21 = vsyncpa [#allocation9], 0 }
   0x3   :  { %22 = vsyncpa [#allocation12], 0 }
   0x4   :  { %23 = vsyncpa [#allocation15], 0 }
   0x5   :  { %24 = vsyncpa [#allocation4], 0 }
   0x6   :  { %25 = vsyncpa [#allocation18], 0  ;;  %s3272_s25 = smov [#allocation5]   ;;  %s3273_s27 = smov [#allocation8]  }
   0x7   :  { %s43_s26 = sshll.u32 %s3272_s25, 4  ;;  %s67_s28 = sshll.u32 %s3273_s27, 4  ;;  %s44_s26 = int_to_ptr.vmem [resolvable:$true] %s43_s26  ;;  %s3365_s28 = int_to_ptr.vmem [resolvable:$true] %s67_s28 }
   0x8   :  { %s3038_s14 = scalar_lea.hbm %s3928_s1, 256 }
   0x9   :  { %p3039_p0 = scmp.ne.s32.totalorder %s3928_s1, %s3038_s14  ;;  %p3042_p1 = scmp.lt.u32.totalorder %s3038_s14, %s3928_s1 }
   0xb   :  { %p3044_p2 = pnand %p3042_p1, %p3039_p0 }
   0xd   :  { %3047 = shalt.err (!%p3044_p2)
}
   0xe   :  { %s3048_s19 = scalar_lea.vmem %s44_s26, 256  ;;  %p3053_p4 = scmp.lt.s32.totalorder %s44_s26, %s44_s26 }
   0xf   :  { %p3049_p3 = scmp.ne.s32.totalorder %s44_s26, %s3048_s19  ;;  %p3054_p5 = scmp.lt.s32.totalorder %s3048_s19, %s3048_s19 }
  0x11   :  { %p3055_p6 = por %p3054_p5, %p3053_p4 }
  0x13   :  { %p3056_p7 = pnand %p3055_p6, %p3049_p3 }
  0x15   :  { %3059 = shalt.err (!%p3056_p7)
}
  0x16   :  { %s3274_s20 = smov 32   ;;  %s3275_s21 = smov 2  }
  0x17   :  { %49 = dma.hbm_to_vmem [thread:$0]  %s3928_s1, 256, %s44_s26, [#allocation6], %s3274_s20, %s3274_s20, %s3275_s21  }
  0x18   :  { %s3060_s27 = scalar_lea.hbm %s3930_s3, 256 }
  0x19   :  { %p3061_p8 = scmp.ne.s32.totalorder %s3930_s3, %s3060_s27  ;;  %p3064_p9 = scmp.lt.u32.totalorder %s3060_s27, %s3930_s3 }
  0x1b   :  { %p3066_p10 = pnand %p3064_p9, %p3061_p8 }
  0x1d   :  { %3069 = shalt.err (!%p3066_p10)
}
  0x1e   :  { %s3070_s16 = scalar_lea.vmem %s3365_s28, 256  ;;  %p3075_p12 = scmp.lt.s32.totalorder %s3365_s28, %s3365_s28 }
  0x1f   :  { %p3071_p11 = scmp.ne.s32.totalorder %s3365_s28, %s3070_s16  ;;  %p3076_p13 = scmp.lt.s32.totalorder %s3070_s16, %s3070_s16 }
  0x21   :  { %p3077_p0 = por %p3076_p13, %p3075_p12 }
  0x23   :  { %p3078_p1 = pnand %p3077_p0, %p3071_p11 }
  0x25   :  { %3081 = shalt.err (!%p3078_p1)
}
  0x26   :  { %73 = dma.hbm_to_vmem [thread:$0]  %s3930_s3, 256, %s3365_s28, [#allocation9], %s3274_s20, %s3274_s20, %s3275_s21  }
  0x27   :  { %s3276_s17 = smov [#allocation11]   ;;  %s3277_s19 = smov [#allocation2]  }
  0x28   :  { %s91_s18 = sshll.u32 %s3276_s17, 4  ;;  %s31_s22 = sshll.u32 %s3277_s19, 4  ;;  %s92_s18 = int_to_ptr.vmem [resolvable:$true] %s91_s18  ;;  %s3402_s22 = int_to_ptr.vmem [resolvable:$true] %s31_s22 }
  0x29   :  { %s3082_s25 = scalar_lea.hbm %s3932_s5, 512 }
  0x2a   :  { %p3083_p2 = scmp.ne.s32.totalorder %s3932_s5, %s3082_s25  ;;  %p3086_p3 = scmp.lt.u32.totalorder %s3082_s25, %s3932_s5 }
  0x2c   :  { %p3088_p4 = pnand %p3086_p3, %p3083_p2 }
  0x2e   :  { %3091 = shalt.err (!%p3088_p4)
}
  0x2f   :  { %s3092_s3 = scalar_lea.vmem %s92_s18, 512  ;;  %p3097_p6 = scmp.lt.s32.totalorder %s92_s18, %s92_s18 }
  0x30   :  { %p3093_p5 = scmp.ne.s32.totalorder %s92_s18, %s3092_s3  ;;  %p3098_p7 = scmp.lt.s32.totalorder %s3092_s3, %s3092_s3 }
  0x32   :  { %p3099_p8 = por %p3098_p7, %p3097_p6 }
  0x34   :  { %p3100_p9 = pnand %p3099_p8, %p3093_p5 }
  0x36   :  { %3103 = shalt.err (!%p3100_p9)
}
  0x37   :  { %s3278_s28 = smov 128   ;;  %s3279_s15 = smov 8  }
  0x38   :  { %97 = dma.hbm_to_vmem [thread:$0]  %s3932_s5, 512, %s92_s18, [#allocation12], %s3278_s28, %s3278_s28, %s3279_s15  }
  0x39   :  { %s3104_s19 = scalar_lea.hbm %s3927_s0, 256 }
  0x3a   :  { %p3105_p10 = scmp.ne.s32.totalorder %s3927_s0, %s3104_s19  ;;  %p3108_p11 = scmp.lt.u32.totalorder %s3104_s19, %s3927_s0 }
  0x3c   :  { %p3110_p12 = pnand %p3108_p11, %p3105_p10 }
  0x3e   :  { %3113 = shalt.err (!%p3110_p12)
}
  0x3f   :  { %s3114_s29 = scalar_lea.vmem %s3402_s22, 256  ;;  %p3119_p0 = scmp.lt.s32.totalorder %s3402_s22, %s3402_s22 }
  0x40   :  { %p3115_p13 = scmp.ne.s32.totalorder %s3402_s22, %s3114_s29  ;;  %p3120_p1 = scmp.lt.s32.totalorder %s3114_s29, %s3114_s29 }
  0x42   :  { %p3121_p2 = por %p3120_p1, %p3119_p0 }
  0x44   :  { %p3122_p3 = pnand %p3121_p2, %p3115_p13 }
  0x46   :  { %3125 = shalt.err (!%p3122_p3)
}
  0x47   :  { %37 = dma.hbm_to_vmem [thread:$0]  %s3927_s0, 256, %s3402_s22, [#allocation3], %s3274_s20, %s3274_s20, %s3275_s21  }
  0x48   :  { %s3280_s30 = smov [#allocation7]   ;;  %s3281_s3 = smov [#allocation10]  }
  0x49   :  { %s55_s14 = sshll.u32 %s3280_s30, 4  ;;  %s79_s16 = sshll.u32 %s3281_s3, 4  ;;  %s56_s14 = int_to_ptr.vmem [resolvable:$true] %s55_s14  ;;  %s3439_s16 = int_to_ptr.vmem [resolvable:$true] %s79_s16 }
  0x4a   :  { %s3126_s17 = scalar_lea.hbm %s3929_s2, 256 }
  0x4b   :  { %p3127_p4 = scmp.ne.s32.totalorder %s3929_s2, %s3126_s17  ;;  %p3130_p5 = scmp.lt.u32.totalorder %s3126_s17, %s3929_s2 }
  0x4d   :  { %p3132_p6 = pnand %p3130_p5, %p3127_p4 }
  0x4f   :  { %3135 = shalt.err (!%p3132_p6)
}
  0x50   :  { %s3136_s0 = scalar_lea.vmem %s56_s14, 256  ;;  %p3141_p8 = scmp.lt.s32.totalorder %s56_s14, %s56_s14 }
  0x51   :  { %p3137_p7 = scmp.ne.s32.totalorder %s56_s14, %s3136_s0  ;;  %p3142_p9 = scmp.lt.s32.totalorder %s3136_s0, %s3136_s0 }
  0x53   :  { %p3143_p10 = por %p3142_p9, %p3141_p8 }
  0x55   :  { %p3144_p11 = pnand %p3143_p10, %p3137_p7 }
  0x57   :  { %3147 = shalt.err (!%p3144_p11)
}
  0x58   :  { %61 = dma.hbm_to_vmem [thread:$0]  %s3929_s2, 256, %s56_s14, [#allocation6], %s3274_s20, %s3274_s20, %s3275_s21  }
  0x59   :  { %s3148_s18 = scalar_lea.hbm %s3931_s4, 512 }
  0x5a   :  { %p3149_p12 = scmp.ne.s32.totalorder %s3931_s4, %s3148_s18  ;;  %p3152_p13 = scmp.lt.u32.totalorder %s3148_s18, %s3931_s4 }
  0x5c   :  { %p3154_p0 = pnand %p3152_p13, %p3149_p12 }
  0x5e   :  { %3157 = shalt.err (!%p3154_p0)
}
  0x5f   :  { %s3158_s17 = scalar_lea.vmem %s3439_s16, 512  ;;  %p3163_p2 = scmp.lt.s32.totalorder %s3439_s16, %s3439_s16 }
  0x60   :  { %p3159_p1 = scmp.ne.s32.totalorder %s3439_s16, %s3158_s17  ;;  %p3164_p3 = scmp.lt.s32.totalorder %s3158_s17, %s3158_s17 }
  0x62   :  { %p3165_p4 = por %p3164_p3, %p3163_p2 }
  0x64   :  { %p3166_p5 = pnand %p3165_p4, %p3159_p1 }
  0x66   :  { %3169 = shalt.err (!%p3166_p5)
}
  0x67   :  { %85 = dma.hbm_to_vmem [thread:$0]  %s3931_s4, 512, %s3439_s16, [#allocation9], %s3278_s28, %s3278_s28, %s3279_s15  }
  0x68   :  { %s3282_s19 = smov [#allocation13]   ;;  %s3283_s24 = smov [#allocation14]  }
  0x69   :  { %s103_s23 = sshll.u32 %s3282_s19, 4  ;;  %s115_s25 = sshll.u32 %s3283_s24, 4  ;;  %s104_s23 = int_to_ptr.vmem [resolvable:$true] %s103_s23  ;;  %s3476_s25 = int_to_ptr.vmem [resolvable:$true] %s115_s25 }
  0x6a   :  { %s3170_s27 = scalar_lea.hbm %s3933_s6, 512 }
  0x6b   :  { %p3171_p6 = scmp.ne.s32.totalorder %s3933_s6, %s3170_s27  ;;  %p3174_p7 = scmp.lt.u32.totalorder %s3170_s27, %s3933_s6 }
  0x6d   :  { %p3176_p8 = pnand %p3174_p7, %p3171_p6 }
  0x6f   :  { %3179 = shalt.err (!%p3176_p8)
}
  0x70   :  { %s3180_s4 = scalar_lea.vmem %s104_s23, 512  ;;  %p3185_p10 = scmp.lt.s32.totalorder %s104_s23, %s104_s23 }
  0x71   :  { %p3181_p9 = scmp.ne.s32.totalorder %s104_s23, %s3180_s4  ;;  %p3186_p11 = scmp.lt.s32.totalorder %s3180_s4, %s3180_s4 }
  0x73   :  { %p3187_p12 = por %p3186_p11, %p3185_p10 }
  0x75   :  { %p3188_p13 = pnand %p3187_p12, %p3181_p9 }
  0x77   :  { %3191 = shalt.err (!%p3188_p13)
}
  0x78   :  { %109 = dma.hbm_to_vmem [thread:$0]  %s3933_s6, 512, %s104_s23, [#allocation12], %s3278_s28, %s3278_s28, %s3279_s15  }
  0x79   :  { %s3192_s17 = scalar_lea.hbm %s3934_s7, 512 }
  0x7a   :  { %p3193_p0 = scmp.ne.s32.totalorder %s3934_s7, %s3192_s17  ;;  %p3196_p1 = scmp.lt.u32.totalorder %s3192_s17, %s3934_s7 }
  0x7c   :  { %p3198_p2 = pnand %p3196_p1, %p3193_p0 }
  0x7e   :  { %3201 = shalt.err (!%p3198_p2)
}
  0x7f   :  { %s3202_s0 = scalar_lea.vmem %s3476_s25, 512  ;;  %p3207_p4 = scmp.lt.s32.totalorder %s3476_s25, %s3476_s25 }
  0x80   :  { %p3203_p3 = scmp.ne.s32.totalorder %s3476_s25, %s3202_s0  ;;  %p3208_p5 = scmp.lt.s32.totalorder %s3202_s0, %s3202_s0 }
  0x82   :  { %p3209_p6 = por %p3208_p5, %p3207_p4 }
  0x84   :  { %p3210_p7 = pnand %p3209_p6, %p3203_p3 }
  0x86   :  { %3213 = shalt.err (!%p3210_p7)
}
  0x87   :  { %121 = dma.hbm_to_vmem [thread:$0]  %s3934_s7, 512, %s3476_s25, [#allocation15], %s3278_s28, %s3278_s28, %s3279_s15  }
  0x88   :  { %3258 = dma.done.wait [#allocation3], 256  }
  0x89   :  { %3259 = vsyncadd [#allocation3], 4294967040 }
  0x8a   :  { %3260 = dma.done.wait [#allocation6], 512  }
  0x8b   :  { %3261 = vsyncadd [#allocation6], 4294966784 }
  0x8c   :  { %3262 = dma.done.wait [#allocation9], 768  }
  0x8d   :  { %3263 = vsyncadd [#allocation9], 4294966528 }
  0x8e   :  { %3264 = dma.done.wait [#allocation12], 1024  }
  0x8f   :  { %3265 = vsyncadd [#allocation12], 4294966272 }
  0x90   :  { %3266 = dma.done.wait [#allocation15], 512  }
  0x91   :  { %3267 = vsyncadd [#allocation15], 4294966784  ;;  %v3284_v0 = vmov 0.0|0.0   ;;  %vm3285_vm0 = vmmov 0   ;;  %v3286_v1 = vmov 0.0   ;;  %vm242_vm1 = vcmask 261120  }
  0x92   :  { %2919 = vmatprep.subr.bf16.mxu0 %v3284_v0  ;;  %2759 = vmatprep.mubr.msk.f32.mxu0 %vm3285_vm0, %v3286_v1  ;;  %v154_v2 = vld [vmem:[#allocation10] sm:$0xff]  ;;  %v155_v3 = vld [vmem:[#allocation10 + $0x8] sm:$0xff]  ;;  %vm3521_vm2 = vmpackc.low %vm242_vm1, %vm242_vm1  ;;  %vm222_vm3 = vcmask 1041409   ;;  %vm225_vm4 = vcmask 1042434   ;;  %vm228_vm5 = vcmask 1043459   ;;  %vm231_vm6 = vcmask 1044484  }
  0x93   :  { %2927 = vmatprep.subr.bf16.mxu1 %v3284_v0  ;;  %2770 = vmatprep.mubr.msk.f32.mxu1 %vm3285_vm0, %v3286_v1  ;;  %v3525_v5 = vpack.c.bf16 %v155_v3, %v154_v2  ;;  %v176_v6 = vld [vmem:[#allocation2 + $0x2] sm:$0x1]  ;;  %v156_v7 = vld [vmem:[#allocation10 + $0x10] sm:$0xff]  ;;  %v177_v8 = vld [vmem:[#allocation2 + $0x4] sm:$0x1]  ;;  %vm234_vm7 = vcmask 1045509  }
  0x94   :  { %v178_v9 = vld [vmem:[#allocation2 + $0x6] sm:$0x1]  ;;  %v179_v10 = vld [vmem:[#allocation2 + $0x8] sm:$0x1]  ;;  %v175_v11 = vld [vmem:[#allocation2] sm:$0x1] }
  0x95   :  { %2922 = vmatpush3.bf16.xpose.msk.msra.mxu0 %vm3521_vm2, %v3525_v5  ;;  %v180_v12 = vld [vmem:[#allocation2 + $0xa] sm:$0x1]  ;;  %v181_v13 = vld [vmem:[#allocation2 + $0xc] sm:$0x1]  ;;  %v157_v14 = vld [vmem:[#allocation10 + $0x18] sm:$0xff]  ;;  %v221_v15 = vrot.slane %v176_v6, 7 }
  0x96   :  { %2923 = vmatprep.subr.bf16.mxu0 %v3284_v0  ;;  %v224_v16 = vrot.slane %v177_v8, 6  ;;  %v227_v17 = vrot.slane %v178_v9, 5  ;;  %v166_v18 = vld [vmem:[#allocation14] sm:$0xff]  ;;  %v167_v19 = vld [vmem:[#allocation14 + $0x8] sm:$0xff]  ;;  %v230_v20 = vrot.slane %v179_v10, 4  ;;  %v233_v24 = vrot.slane %v180_v12, 3 }
  0x97   :  { %v3531_v21 = vpack.c.bf16 %v167_v19, %v166_v18  ;;  %v182_v22 = vld [vmem:[#allocation2 + $0xe] sm:$0x1]  ;;  %v223_v23 = vsel %vm222_vm3, %v221_v15, %v175_v11  ;;  %v236_v25 = vrot.slane %v181_v13, 2  ;;  %v168_v26 = vld [vmem:[#allocation14 + $0x10] sm:$0xff]  ;;  %v169_v27 = vld [vmem:[#allocation14 + $0x18] sm:$0xff]  ;;  %v3534_v28 = vpack.c.bf16 %v157_v14, %v156_v7  ;;  %s3287_s29 = smov 112  }
  0x98   :  { %v226_v29 = vsel %vm225_vm4, %v224_v16, %v223_v23  ;;  %v199_v30 = vld [vmem:[#allocation8] sm:$0x1]  ;;  %v200_v31 = vld [vmem:[#allocation8 + $0x2] sm:$0x1]  ;;  %v201_v32 = vld [vmem:[#allocation8 + $0x4] sm:$0x1]  ;;  %v3547_v48 = vpack.c.bf16 %v169_v27, %v168_v26 }
  0x99   :  { %2930 = vmatpush3.bf16.xpose.msk.msra.mxu1 %vm3521_vm2, %v3531_v21  ;;  %v229_v33 = vsel %vm228_vm5, %v227_v17, %v226_v29  ;;  %v202_v34 = vld [vmem:[#allocation8 + $0x6] sm:$0x1]  ;;  %v203_v35 = vld [vmem:[#allocation8 + $0x8] sm:$0x1]  ;;  %v204_v36 = vld [vmem:[#allocation8 + $0xa] sm:$0x1] }
  0x9a   :  { %2931 = vmatprep.subr.bf16.mxu1 %v3284_v0  ;;  %v232_v37 = vsel %vm231_vm6, %v230_v20, %v229_v33  ;;  %vm237_vm8 = vcmask 1046534   ;;  %v205_v38 = vld [vmem:[#allocation8 + $0xc] sm:$0x1]  ;;  %v335_v39 = vrot.slane %v200_v31, 7  ;;  %v337_v40 = vrot.slane %v201_v32, 6  ;;  %v158_v43 = vld [vmem:[#allocation11] sm:$0xff] }
  0x9b   :  { %v235_v41 = vsel %vm234_vm7, %v233_v24, %v232_v37  ;;  %v239_v42 = vrot.slane %v182_v22, 1  ;;  %v206_v44 = vld [vmem:[#allocation8 + $0xe] sm:$0x1]  ;;  %v339_v45 = vrot.slane %v202_v34, 5  ;;  %v341_v46 = vrot.slane %v203_v35, 4  ;;  %v159_v47 = vld [vmem:[#allocation11 + $0x8] sm:$0xff] }
  0x9c   :  { %v336_v49 = vsel %vm222_vm3, %v335_v39, %v199_v30  ;;  %v343_v50 = vrot.slane %v204_v36, 3  ;;  %v184_v51 = vld [vmem:[#allocation5 + $0x2] sm:$0x1]  ;;  %v185_v52 = vld [vmem:[#allocation5 + $0x4] sm:$0x1]  ;;  %v238_v53 = vsel %vm237_vm8, %v236_v25, %v235_v41  ;;  %vm240_vm9 = vcmask 1047559  }
  0x9d   :  { %2926 = vmatpush3.bf16.xpose.msk.msra.mxu0 %vm3521_vm2, %v3534_v28  ;;  %v338_v54 = vsel %vm225_vm4, %v337_v40, %v336_v49  ;;  %v345_v55 = vrot.slane %v205_v38, 2  ;;  %v183_v56 = vld [vmem:[#allocation5] sm:$0x1]  ;;  %v186_v57 = vld [vmem:[#allocation5 + $0x6] sm:$0x1]  ;;  %v441_v59 = vrot.slane %v184_v51, 7  ;;  %v3554_v61 = vpack.c.bf16 %v159_v47, %v158_v43 }
  0x9e   :  { %2935 = vmatprep.subr.bf16.mxu0 %v3284_v0  ;;  %v340_v58 = vsel %vm228_vm5, %v339_v45, %v338_v54  ;;  %v443_v60 = vrot.slane %v185_v52, 6  ;;  %v347_v63 = vrot.slane %v206_v44, 1  ;;  %v241_v2 = vsel %vm240_vm9, %v239_v42, %v238_v53  ;;  %v187_v6 = vld [vmem:[#allocation5 + $0x8] sm:$0x1]  ;;  %v188_v11 = vld [vmem:[#allocation5 + $0xa] sm:$0x1] }
  0x9f   :  { %v342_v62 = vsel %vm231_vm6, %v341_v46, %v340_v58  ;;  %v442_v7 = vsel %vm222_vm3, %v441_v59, %v183_v56  ;;  %v445_v8 = vrot.slane %v186_v57, 5  ;;  %v447_v12 = vrot.slane %v187_v6, 4  ;;  %v160_v15 = vld [vmem:[#allocation11 + $0x10] sm:$0xff]  ;;  %v161_v16 = vld [vmem:[#allocation11 + $0x18] sm:$0xff]  ;;  %v171_v35 = vld [vmem:[%s3936_s9] sm:$0x1] }
  0xa0   :  { %v344_v3 = vsel %vm234_vm7, %v343_v50, %v342_v62  ;;  %v444_v10 = vsel %vm225_vm4, %v443_v60, %v442_v7  ;;  %v189_v17 = vld [vmem:[#allocation5 + $0xc] sm:$0x1]  ;;  %v449_v18 = vrot.slane %v188_v11, 3  ;;  %v3577_v20 = vpack.c.bf16 %v161_v16, %v160_v15  ;;  %v190_v22 = vld [vmem:[#allocation5 + $0xe] sm:$0x1]  ;;  %v162_v39 = vld [vmem:[#allocation13] sm:$0xff] }
  0xa1   :  { %2934 = vmatpush3.bf16.xpose.msk.msra.mxu1 %vm3521_vm2, %v3547_v48  ;;  %v346_v9 = vsel %vm237_vm8, %v345_v55, %v344_v3  ;;  %v446_v14 = vsel %vm228_vm5, %v445_v8, %v444_v10  ;;  %v451_v23 = vrot.slane %v189_v17, 2  ;;  %v453_v25 = vrot.slane %v190_v22, 1  ;;  %v172_v36 = vld [vmem:[%s3938_s11] sm:$0x1]  ;;  %v163_v40 = vld [vmem:[#allocation13 + $0x8] sm:$0xff]  ;;  %s3288_s5 = smov 120  }
  0xa2   :  { %2943 = vmatprep.subr.bf16.mxu1 %v3284_v0  ;;  %v348_v13 = vsel %vm240_vm9, %v347_v63, %v346_v9  ;;  %v448_v19 = vsel %vm231_vm6, %v447_v12, %v446_v14  ;;  %v540_v31 = vlaneseq  ;;  %v173_v37 = vadd.f32 %v172_v36, %v171_v35  ;;  %v3612_v47 = vld [vmem:[%s3935_s8] ss:$0 sm:$0xff]  ;;  %v164_v49 = vld [vmem:[#allocation13 + $0x10] sm:$0xff]  ;;  %v165_v50 = vld [vmem:[#allocation13 + $0x18] sm:$0xff]  ;;  %s3289_s8 = smov 104   ;;  %s3291_s4 = smov 16  }
  0xa3   :  { %v450_v24 = vsel %vm234_vm7, %v449_v18, %v448_v19  ;;  %v3602_v42 = vpack.c.bf16 %v163_v40, %v162_v39  ;;  %vm658_vm10 = vcmask 64512   ;;  %v192_v51 = vld [vmem:[#allocation7 + $0x2] sm:$0x1]  ;;  %v193_v52 = vld [vmem:[#allocation7 + $0x4] sm:$0x1]  ;;  %v3619_v55 = vpack.c.bf16 %v165_v50, %v164_v49  ;;  %s3293_s16 = smov [#allocation17]  }
  0xa4   :  { %2760 = vmatmul.mubr.msk.f32.vlgmr.msra.gmra.mrb[0].mxu0 %vm242_vm1, %v241_v2  ;;  %v452_v26 = vsel %vm237_vm8, %v451_v23, %v450_v24  ;;  %v3591_v34 = vshrl.u32 %v540_v31, 7  ;;  %v194_v53 = vld [vmem:[#allocation7 + $0x6] sm:$0x1]  ;;  %v191_v56 = vld [vmem:[#allocation7] sm:$0x1]  ;;  %v560_v60 = vrot.slane %v192_v51, 7 }
  0xa5   :  { %2938 = vmatpush3.bf16.xpose.msk.msra.mxu0 %vm3521_vm2, %v3554_v61  ;;  %2781 = vmatprep.mubr.msk.f32.mxu0 %vm3285_vm0, %v3286_v1  ;;  %v454_v27 = vsel %vm240_vm9, %v453_v25, %v452_v26  ;;  %v195_v57 = vld [vmem:[#allocation7 + $0x8] sm:$0x1]  ;;  %v196_v58 = vld [vmem:[#allocation7 + $0xa] sm:$0x1]  ;;  %v197_v59 = vld [vmem:[#allocation7 + $0xc] sm:$0x1] }
  0xa6   :  { %2939 = vmatprep.subr.bf16.mxu0 %v3284_v0  ;;  %v542_v38 = vsub.s32 0, %v3591_v34  ;;  %v562_v62 = vrot.slane %v193_v52, 6  ;;  %v564_v63 = vrot.slane %v194_v53, 5  ;;  %v198_v2 = vld [vmem:[#allocation7 + $0xe] sm:$0x1]  ;;  %v566_v3 = vrot.slane %v195_v57, 4 }
  0xa7   :  { %v561_v6 = vsel %vm222_vm3, %v560_v60, %v191_v56  ;;  %v568_v7 = vrot.slane %v196_v58, 3  ;;  %v570_v9 = vrot.slane %v197_v59, 2  ;;  %v572_v11 = vrot.slane %v198_v2, 1  ;;  %s2593_s3 = sshll.u32 %s3293_s16, 4  ;;  %s2594_s3 = int_to_ptr.vmem [resolvable:$true] %s2593_s3 }
  0xa8   :  { %2771 = vmatmul.mubr.msk.f32.vlgmr.msra.gmra.mrb[0].mxu1 %vm242_vm1, %v348_v13  ;;  %v3600_v41 = vrot.slane %v173_v37, %v542_v38  ;;  %v563_v8 = vsel %vm225_vm4, %v562_v62, %v561_v6  ;;  %vm1343_vm11 = vcmask 130048   ;;  %vm1345_vm12 = vcmask 195584   ;;  %s3214_s1 = scalar_lea.vmem %s2594_s3, 1024  ;;  %p3219_p9 = scmp.lt.s32.totalorder %s2594_s3, %s2594_s3 }
  0xa9   :  { %2792 = vmatprep.mubr.msk.f32.mxu1 %vm3285_vm0, %v3286_v1  ;;  %2946 = vmatpush3.bf16.xpose.msk.msra.mxu1 %vm3521_vm2, %v3602_v42  ;;  %v565_v10 = vsel %vm228_vm5, %v564_v63, %v563_v8  ;;  %vm1405_vm13 = vcmask 253952   ;;  %p3215_p8 = scmp.ne.s32.totalorder %s2594_s3, %s3214_s1  ;;  %p3220_p10 = scmp.lt.s32.totalorder %s3214_s1, %s3214_s1 }
  0xaa   :  { %2947 = vmatprep.subr.bf16.mxu1 %v3284_v0  ;;  %v567_v12 = vsel %vm231_vm6, %v566_v3, %v565_v10  ;;  %v1415_v10 = vld [vmem:[#allocation2 + $0x3] sm:$0x1] }
  0xab   :  { %v569_v13 = vsel %vm234_vm7, %v568_v7, %v567_v12  ;;  %v1454_v12 = vrot.slane %v1415_v10, 7  ;;  %p3221_p11 = por %p3220_p10, %p3219_p9 }
  0xac   :  { %v571_v14 = vsel %vm237_vm8, %v570_v9, %v569_v13  ;;  %v1414_v13 = vld [vmem:[#allocation2 + $0x1] sm:$0x1] }
  0xad   :  { %2942 = vmatpush3.bf16.xpose.msk.msra.mxu0 %vm3521_vm2, %v3577_v20  ;;  %v573_v15 = vsel %vm240_vm9, %v572_v11, %v571_v14  ;;  %v1416_v11 = vld [vmem:[#allocation2 + $0x5] sm:$0x1]  ;;  %v1417_v14 = vld [vmem:[#allocation2 + $0x7] sm:$0x1]  ;;  %p3222_p12 = pnand %p3221_p11, %p3215_p8 }
  0xae   :  { %2795 = vmatprep.subr.mxu0 %v3286_v1 }
  0xb1   :  { %2950 = vmatpush3.bf16.xpose.msk.msra.mxu1 %vm3521_vm2, %v3619_v55 }
  0xb2   :  { %2800 = vmatprep.subr.mxu1 %v3286_v1 }
  0xb4   :  { %2782 = vmatmul.mubr.msk.f32.vlgmr.msra.gmra.mrb[2].mxu0 %vm242_vm1, %v454_v27 }
  0xb5   :  { %2797 = vmatprep.mubr.msk.f32.mxu0 %vm3285_vm0, %v3286_v1 }
  0xb8   :  { %2793 = vmatmul.mubr.msk.f32.vlgmr.msra.gmra.mrb[2].mxu1 %vm242_vm1, %v573_v15  ;;  %v1456_v15 = vrot.slane %v1416_v11, 6 }
  0xb9   :  { %2802 = vmatprep.mubr.msk.f32.mxu1 %vm3285_vm0, %v3286_v1 }
 0x177   :  { %v323_v29 = vpop.f32.mrb[0].mxu0 }
 0x178   :  { %v2761_v30 = vpop.f32.mrb[1].mxu0  ;;  %v324_v54 = vadd.f32 %v3612_v47, %v323_v29 }
 0x17b   :  { %v429_v32 = vpop.f32.mrb[0].mxu1 }
 0x17c   :  { %v2772_v33 = vpop.f32.mrb[1].mxu1 }
 0x187   :  { %v535_v43 = vpop.f32.mrb[2].mxu0 }
 0x188   :  { %v536_v44 = vadd.f32 %v535_v43, %v429_v32  ;;  %v2783_v45 = vpop.f32.mrb[3].mxu0 }
 0x18a   :  { %v545_v46 = vadd.f32 %v3600_v41, %v536_v44 }
 0x18b   :  { %v654_v29 = vpop.f32.mrb[2].mxu1 }
 0x18c   :  { %994 = vrot.lane.b32.xlu1 %v545_v46, %s3287_s29  ;;  %824 = vrot.lane.b32.xlu0 %v545_v46, %s3288_s5  ;;  %v2794_v31 = vpop.f32.mrb[3].mxu1 }
 0x18d   :  { %2796 = vmatpush3.xpose.msk.msra.mxu0 %vm658_vm10, %v545_v46 }
 0x18e   :  { %2805 = vmatprep.subr.mxu0 %v3286_v1 }
 0x190   :  { %2798 = vmatmul.mubr.msk.f32.vlgmr.msra.gmra.mrb[4].mxu0 %vm658_vm10, %v324_v54  ;;  %992 = vrot.lane.b32.xlu1 %v324_v54, %s3287_s29 }
 0x191   :  { %822 = vrot.lane.b32.xlu0 %v324_v54, %s3288_s5  ;;  %2807 = vmatprep.mubr.msk.f32.mxu0 %vm3285_vm0, %v3286_v1 }
 0x194   :  { %1161 = vrot.lane.b32.xlu1 %v324_v54, %s3289_s8 }
 0x195   :  { %1163 = vrot.lane.b32.xlu0 %v545_v46, %s3289_s8 }
 0x1fe   :  { %v825_v16 = vpop.permute.xlu0 %824  ;;  %v995_v17 = vpop.permute.xlu1 %994 }
 0x1ff   :  { %2806 = vmatpush3.xpose.msk.msra.mxu0 %vm658_vm10, %v825_v16  ;;  %v1418_v16 = vld [vmem:[#allocation2 + $0x9] sm:$0x1] }
 0x200   :  { %2815 = vmatprep.subr.mxu0 %v3286_v1 }
 0x202   :  { %v993_v19 = vpop.permute.xlu1 %992 }
 0x203   :  { %v823_v18 = vpop.permute.xlu0 %822 }
 0x204   :  { %2808 = vmatmul.mubr.msk.f32.vlgmr.msra.gmra.mrb[6].mxu0 %vm658_vm10, %v823_v18  ;;  %v1458_v18 = vrot.slane %v1417_v14, 5  ;;  %v1439_v14 = vld [vmem:[#allocation8 + $0x3] sm:$0x1] }
 0x205   :  { %2816 = vmatpush3.xpose.msk.msra.mxu0 %vm658_vm10, %v995_v17  ;;  %2817 = vmatprep.mubr.msk.f32.mxu0 %vm3285_vm0, %v3286_v1  ;;  %v1455_v17 = vsel %vm222_vm3, %v1454_v12, %v1414_v13 }
 0x206   :  { %2825 = vmatprep.subr.mxu0 %v3286_v1  ;;  %v1162_v23 = vpop.permute.xlu1 %1161 }
 0x207   :  { %v1164_v22 = vpop.permute.xlu0 %1163 }
 0x208   :  { %2818 = vmatmul.mubr.msk.f32.vlgmr.msra.gmra.mrb[8].mxu0 %vm658_vm10, %v993_v19  ;;  %v1419_v19 = vld [vmem:[#allocation2 + $0xb] sm:$0x1] }
 0x209   :  { %2826 = vmatpush3.xpose.msk.msra.mxu0 %vm658_vm10, %v1164_v22  ;;  %2827 = vmatprep.mubr.msk.f32.mxu0 %vm3285_vm0, %v3286_v1  ;;  %v1457_v22 = vsel %vm225_vm4, %v1456_v15, %v1455_v17  ;;  %v1440_v17 = vld [vmem:[#allocation8 + $0x5] sm:$0x1] }
 0x20a   :  { %2951 = vmatprep.subr.bf16.mxu0 %v3284_v0 }
 0x20c   :  { %2828 = vmatmul.mubr.msk.f32.vlgmr.msra.gmra.mrb[10].mxu0 %vm658_vm10, %v1162_v23  ;;  %v1460_v23 = vrot.slane %v1418_v16, 4 }
 0x20d   :  { %2954 = vmatpush3.bf16.xpose.msk.msra.mxu0 %vm3521_vm2, %v3525_v5  ;;  %2843 = vmatprep.mubr.msk.f32.mxu0 %vm3285_vm0, %v3286_v1  ;;  %v3669_v5 = vld [vmem:[%s3937_s10] ss:$0 sm:$0xff]  ;;  %s3290_s10 = smov 24  }
 0x20e   :  { %2955 = vmatprep.subr.bf16.mxu0 %v3284_v0  ;;  %v3672_v30 = vadd.f32 %v3669_v5, %v654_v29 }
 0x210   :  { %2801 = vmatpush3.msra.mxu1 %v3672_v30 }
 0x211   :  { %2810 = vmatprep.subr.mxu1 %v3286_v1 }
 0x215   :  { %2958 = vmatpush3.bf16.xpose.msk.msra.mxu0 %vm3521_vm2, %v3534_v28 }
 0x216   :  { %2967 = vmatprep.subr.bf16.mxu0 %v3284_v0 }
 0x263   :  { %v731_v24 = vpop.f32.mrb[4].mxu0 }
 0x264   :  { %v735_v25 = vmul.f32 0.35355338, %v731_v24  ;;  %v2799_v26 = vpop.f32.mrb[5].mxu0  ;;  %v1420_v24 = vld [vmem:[#allocation2 + $0xd] sm:$0x1] }
 0x265   :  { %v1462_v26 = vrot.slane %v1419_v19, 3  ;;  %v1464_v31 = vrot.slane %v1420_v24, 2  ;;  %v1438_v19 = vld [vmem:[#allocation8 + $0x1] sm:$0x1]  ;;  %v1550_v24 = vrot.slane %v1440_v17, 6 }
 0x266   :  { %v736_v27 = vsel %vm658_vm10, %v735_v25, -inf }
 0x267   :  { %737 = vmax.xlane.f32.xlu0 %v736_v27  ;;  %v1421_v27 = vld [vmem:[#allocation2 + $0xf] sm:$0x1] }
 0x2d7   :  { %v896_v28 = vpop.f32.mrb[6].mxu0 }
 0x2d8   :  { %v900_v32 = vmul.f32 0.35355338, %v896_v28  ;;  %v2809_v33 = vpop.f32.mrb[7].mxu0 }
 0x2da   :  { %v901_v35 = vsel %vm658_vm10, %v900_v32, -inf }
 0x2db   :  { %902 = vmax.xlane.f32.xlu1 %v901_v35  ;;  %v1066_v36 = vpop.f32.mrb[8].mxu0 }
 0x2dc   :  { %v1070_v37 = vmul.f32 0.35355338, %v1066_v36  ;;  %v2819_v38 = vpop.f32.mrb[9].mxu0 }
 0x2dd   :  { %v1424_v38 = vld [vmem:[#allocation5 + $0x5] sm:$0x1] }
 0x2de   :  { %v1071_v39 = vsel %vm658_vm10, %v1070_v37, -inf }
 0x2df   :  { %1072 = vmax.xlane.f32.xlu0 %v1071_v39  ;;  %v1235_v40 = vpop.f32.mrb[10].mxu0 }
 0x2e0   :  { %v1239_v43 = vmul.f32 0.35355338, %v1235_v40  ;;  %v2829_v44 = vpop.f32.mrb[11].mxu0  ;;  %v1422_v40 = vld [vmem:[#allocation5 + $0x1] sm:$0x1] }
 0x2e1   :  { %v1644_v44 = vrot.slane %v1424_v38, 6 }
 0x2e2   :  { %v1240_v45 = vsel %vm658_vm10, %v1239_v43, -inf }
 0x2e3   :  { %1241 = vmax.xlane.f32.xlu0 %v1240_v45 }
 0x2ec   :  { %916 = vrot.lane.b32.xlu1 %v3672_v30, %s3288_s5 }
 0x2f4   :  { %v738_v46 = vpop.xlane.xlu0 %737 }
 0x2f5   :  { %v739_v49 = vsub.f32 %v735_v25, %v738_v46  ;;  %v1459_v25 = vsel %vm228_vm5, %v1458_v18, %v1457_v22  ;;  %v1548_v18 = vrot.slane %v1439_v14, 7 }
 0x2f6   :  { %v1461_v29 = vsel %vm231_vm6, %v1460_v23, %v1459_v25  ;;  %v1441_v23 = vld [vmem:[#allocation8 + $0x7] sm:$0x1] }
 0x2f7   :  { %v740_v50 = vmul.f32 1.442695, %v739_v49  ;;  %v1463_v28 = vsel %vm234_vm7, %v1462_v26, %v1461_v29  ;;  %v1442_v26 = vld [vmem:[#allocation8 + $0x9] sm:$0x1] }
 0x2f8   :  { %v1465_v33 = vsel %vm237_vm8, %v1464_v31, %v1463_v28  ;;  %v1443_v31 = vld [vmem:[#allocation8 + $0xb] sm:$0x1]  ;;  %v1554_v28 = vrot.slane %v1442_v26, 4 }
 0x2f9   :  { %3006 = vpow2.f32 %v740_v50  ;;  %v1427_v50 = vld [vmem:[#allocation5 + $0xb] sm:$0x1] }
 0x303   :  { %v3681_v51 = vpop.eup %3006 }
 0x304   :  { %v742_v52 = vsel %vm658_vm10, %v3681_v51, 0.0 }
 0x310   :  { %743 = vadd.xlane.f32.xlu1 %v742_v52  ;;  %v1428_v52 = vld [vmem:[#allocation5 + $0xd] sm:$0x1] }
 0x368   :  { %v903_v53 = vpop.xlane.xlu1 %902 }
 0x369   :  { %v904_v54 = vsub.f32 %v900_v32, %v903_v53  ;;  %v1466_v32 = vrot.slane %v1421_v27, 1  ;;  %v1429_v53 = vld [vmem:[#allocation5 + $0xf] sm:$0x1]  ;;  %v1552_v27 = vrot.slane %v1441_v23, 5 }
 0x36b   :  { %v905_v56 = vmul.f32 1.442695, %v904_v54  ;;  %v1467_v36 = vsel %vm240_vm9, %v1466_v32, %v1465_v33  ;;  %v1444_v32 = vld [vmem:[#allocation8 + $0xd] sm:$0x1]  ;;  %v1556_v33 = vrot.slane %v1443_v31, 3 }
 0x36c   :  { %v1073_v57 = vpop.xlane.xlu0 %1072  ;;  %v917_v35 = vpop.permute.xlu1 %916  ;;  %2844 = vmatmul.mubr.msk.f32.vlgmr.msra.gmra.mrb[12].mxu0 %vm242_vm1, %v1467_v36  ;;  %v1445_v36 = vld [vmem:[#allocation8 + $0xf] sm:$0x1] }
 0x36d   :  { %3008 = vpow2.f32 %v905_v56  ;;  %v1074_v58 = vsub.f32 %v1070_v37, %v1073_v57  ;;  %2970 = vmatpush3.bf16.xpose.msk.msra.mxu0 %vm3521_vm2, %v3554_v61  ;;  %2865 = vmatprep.mubr.msk.f32.mxu0 %vm3285_vm0, %v3286_v1  ;;  %v1426_v61 = vld [vmem:[#allocation5 + $0x9] sm:$0x1]  ;;  %v1560_v38 = vrot.slane %v1445_v36, 1 }
 0x36e   :  { %2971 = vmatprep.subr.bf16.mxu0 %v3284_v0  ;;  %v1648_v57 = vrot.slane %v1426_v61, 4 }
 0x36f   :  { %v1075_v59 = vmul.f32 1.442695, %v1074_v58  ;;  %v1650_v58 = vrot.slane %v1427_v50, 3 }
 0x370   :  { %v1242_v60 = vpop.xlane.xlu0 %1241 }
 0x371   :  { %3010 = vpow2.f32 %v1075_v59  ;;  %v1243_v62 = vsub.f32 %v1239_v43, %v1242_v60  ;;  %v1425_v43 = vld [vmem:[#allocation5 + $0x7] sm:$0x1]  ;;  %v1652_v59 = vrot.slane %v1428_v52, 2  ;;  %v1654_v60 = vrot.slane %v1429_v53, 1 }
 0x372   :  { %v1646_v46 = vrot.slane %v1425_v43, 5 }
 0x373   :  { %v1244_v63 = vmul.f32 1.442695, %v1243_v62 }
 0x375   :  { %3012 = vpow2.f32 %v1244_v63  ;;  %2974 = vmatpush3.bf16.xpose.msk.msra.mxu0 %vm3521_vm2, %v3577_v20 }
 0x376   :  { %2879 = vmatprep.subr.mxu0 %v3286_v1 }
 0x377   :  { %v3685_v2 = vpop.eup %3008 }
 0x378   :  { %v907_v3 = vsel %vm658_vm10, %v3685_v2, 0.0 }
 0x379   :  { %908 = vadd.xlane.f32.xlu0 %v907_v3 }
 0x37b   :  { %v3689_v6 = vpop.eup %3010 }
 0x37c   :  { %v1077_v7 = vsel %vm658_vm10, %v3689_v6, 0.0 }
 0x37d   :  { %1078 = vadd.xlane.f32.xlu1 %v1077_v7 }
 0x37f   :  { %v3693_v8 = vpop.eup %3012 }
 0x380   :  { %v1246_v9 = vsel %vm658_vm10, %v3693_v8, 0.0 }
 0x381   :  { %1247 = vadd.xlane.f32.xlu0 %v1246_v9 }
 0x38e   :  { %1254 = vrot.lane.b32.xlu1 %v3672_v30, %s3289_s8 }
 0x397   :  { %1085 = vrot.lane.b32.xlu0 %v3672_v30, %s3287_s29  ;;  %v1423_v30 = vld [vmem:[#allocation5 + $0x3] sm:$0x1] }
 0x398   :  { %v1642_v39 = vrot.slane %v1423_v30, 7 }
 0x39a   :  { %v1643_v45 = vsel %vm222_vm3, %v1642_v39, %v1422_v40 }
 0x39b   :  { %v1645_v54 = vsel %vm225_vm4, %v1644_v44, %v1643_v45 }
 0x39c   :  { %v1647_v56 = vsel %vm228_vm5, %v1646_v46, %v1645_v54 }
 0x39d   :  { %v744_v37 = vpop.xlane.xlu1 %743  ;;  %v1649_v62 = vsel %vm231_vm6, %v1648_v57, %v1647_v56  ;;  %v1431_v56 = vld [vmem:[#allocation7 + $0x3] sm:$0x1]  ;;  %v1432_v57 = vld [vmem:[#allocation7 + $0x5] sm:$0x1] }
 0x39e   :  { %3014 = vrcp.f32 %v744_v37  ;;  %v1651_v63 = vsel %vm234_vm7, %v1650_v58, %v1649_v62  ;;  %v1558_v37 = vrot.slane %v1444_v32, 2  ;;  %v1433_v58 = vld [vmem:[#allocation7 + $0x7] sm:$0x1]  ;;  %v1737_v62 = vrot.slane %v1431_v56, 7 }
 0x3a8   :  { %v3015_v49 = vpop.eup %3014 }
 0x3a9   :  { %v747_v20 = vmul.f32 %v3015_v49, %v3681_v51  ;;  %v1653_v51 = vsel %vm237_vm8, %v1652_v59, %v1651_v63  ;;  %v1435_v59 = vld [vmem:[#allocation7 + $0xb] sm:$0x1]  ;;  %v1739_v63 = vrot.slane %v1432_v57, 6 }
 0x3aa   :  { %v1655_v3 = vsel %vm240_vm9, %v1654_v60, %v1653_v51  ;;  %v1436_v60 = vld [vmem:[#allocation7 + $0xd] sm:$0x1]  ;;  %v1437_v51 = vld [vmem:[#allocation7 + $0xf] sm:$0x1] }
 0x3ab   :  { %748 = vst.msk [vmem:[#allocation17] sm:$0xff] %vm658_vm10, %v747_v20  ;;  %2803 = vmatmul.mubr.msk.f32.vlgmr.msra.gmra.mrb[4].mxu1 %vm658_vm10, %v747_v20  ;;  %2866 = vmatmul.mubr.msk.f32.vlgmr.msra.gmra.mrb[14].mxu0 %vm242_vm1, %v1655_v3  ;;  %v1430_v20 = vld [vmem:[#allocation7 + $0x1] sm:$0x1]  ;;  %v1741_v3 = vrot.slane %v1433_v58, 5  ;;  %v1749_v14 = vrot.slane %v1437_v51, 1 }
 0x3ac   :  { %2811 = vmatpush3.msra.mxu1 %v917_v35  ;;  %2812 = vmatprep.mubr.msk.f32.mxu1 %vm3285_vm0, %v3286_v1 }
 0x3ad   :  { %2820 = vmatprep.subr.mxu1 %v3286_v1  ;;  %2881 = vmatprep.mubr.msk.f32.mxu0 %vm3285_vm0, %v3286_v1 }
 0x406   :  { %v909_v7 = vpop.xlane.xlu0 %908 }
 0x407   :  { %3016 = vrcp.f32 %v909_v7 }
 0x40a   :  { %v1079_v9 = vpop.xlane.xlu1 %1078 }
 0x40b   :  { %3018 = vrcp.f32 %v1079_v9  ;;  %v1738_v9 = vsel %vm222_vm3, %v1737_v62, %v1430_v20 }
 0x40e   :  { %v1248_v10 = vpop.xlane.xlu0 %1247 }
 0x40f   :  { %3020 = vrcp.f32 %v1248_v10  ;;  %v1745_v10 = vrot.slane %v1435_v59, 3 }
 0x411   :  { %v3017_v11 = vpop.eup %3016 }
 0x412   :  { %v912_v12 = vmul.f32 %v3017_v11, %v3685_v2  ;;  %v1086_v13 = vpop.permute.xlu0 %1085  ;;  %v1255_v2 = vpop.permute.xlu1 %1254  ;;  %v1740_v11 = vsel %vm225_vm4, %v1739_v63, %v1738_v9 }
 0x414   :  { %914 = vst.msk [vmem:[#allocation17 + $0x8] sm:$0xff] %vm658_vm10, %v912_v12  ;;  %2813 = vmatmul.mubr.msk.f32.vlgmr.msra.gmra.mrb[6].mxu1 %vm658_vm10, %v912_v12  ;;  %v1747_v12 = vrot.slane %v1436_v60, 2 }
 0x415   :  { %v3019_v15 = vpop.eup %3018  ;;  %2821 = vmatpush3.msra.mxu1 %v1086_v13  ;;  %2822 = vmatprep.mubr.msk.f32.mxu1 %vm3285_vm0, %v3286_v1  ;;  %v1742_v13 = vsel %vm228_vm5, %v1741_v3, %v1740_v11 }
 0x416   :  { %v1082_v16 = vmul.f32 %v3019_v15, %v3689_v6  ;;  %2830 = vmatprep.subr.mxu1 %v3286_v1  ;;  %v1549_v6 = vsel %vm222_vm3, %v1548_v18, %v1438_v19 }
 0x417   :  { %v1551_v29 = vsel %vm225_vm4, %v1550_v24, %v1549_v6 }
 0x418   :  { %1084 = vst.msk [vmem:[#allocation17 + $0x10] sm:$0xff] %vm658_vm10, %v1082_v16  ;;  %2823 = vmatmul.mubr.msk.f32.vlgmr.msra.gmra.mrb[8].mxu1 %vm658_vm10, %v1082_v16 }
 0x419   :  { %v3021_v22 = vpop.eup %3020  ;;  %2831 = vmatpush3.msra.mxu1 %v1255_v2  ;;  %2832 = vmatprep.mubr.msk.f32.mxu1 %vm3285_vm0, %v3286_v1 }
 0x41a   :  { %v1251_v25 = vmul.f32 %v3021_v22, %v3693_v8  ;;  %2959 = vmatprep.subr.bf16.mxu1 %v3284_v0  ;;  %v1553_v8 = vsel %vm228_vm5, %v1552_v27, %v1551_v29 }
 0x41b   :  { %v1555_v35 = vsel %vm231_vm6, %v1554_v28, %v1553_v8 }
 0x41c   :  { %1253 = vst.msk [vmem:[#allocation17 + $0x18] sm:$0xff] %vm658_vm10, %v1251_v25  ;;  %2833 = vmatmul.mubr.msk.f32.vlgmr.msra.gmra.mrb[10].mxu1 %vm658_vm10, %v1251_v25  ;;  %v1557_v30 = vsel %vm234_vm7, %v1556_v33, %v1555_v35 }
 0x41d   :  { %2854 = vmatprep.mubr.msk.f32.mxu1 %vm3285_vm0, %v3286_v1  ;;  %v1559_v39 = vsel %vm237_vm8, %v1558_v37, %v1557_v30 }
 0x420   :  { %2962 = vmatpush3.bf16.xpose.msk.msra.mxu1 %vm3521_vm2, %v3531_v21  ;;  %v1561_v21 = vsel %vm240_vm9, %v1560_v38, %v1559_v39 }
 0x421   :  { %2963 = vmatprep.subr.bf16.mxu1 %v3284_v0 }
 0x428   :  { %2966 = vmatpush3.bf16.xpose.msk.msra.mxu1 %vm3521_vm2, %v3547_v48 }
 0x429   :  { %2975 = vmatprep.subr.bf16.mxu1 %v3284_v0 }
 0x42f   :  { %2855 = vmatmul.mubr.msk.f32.vlgmr.msra.gmra.mrb[12].mxu1 %vm242_vm1, %v1561_v21 }
 0x430   :  { %2978 = vmatpush3.bf16.xpose.msk.msra.mxu1 %vm3521_vm2, %v3602_v42  ;;  %2876 = vmatprep.mubr.msk.f32.mxu1 %vm3285_vm0, %v3286_v1 }
 0x431   :  { %2979 = vmatprep.subr.bf16.mxu1 %v3284_v0 }
 0x438   :  { %2982 = vmatpush3.bf16.xpose.msk.msra.mxu1 %vm3521_vm2, %v3619_v55 }
 0x439   :  { %2884 = vmatprep.subr.mxu1 %v3286_v1 }
 0x43f   :  { %v1536_v48 = vpop.f32.mrb[12].mxu0 }
 0x440   :  { %v1537_v40 = vadd.f32 %v3612_v47, %v1536_v48  ;;  %v2845_v43 = vpop.f32.mrb[13].mxu0 }
 0x442   :  { %1987 = vrot.lane.b32.xlu0 %v1537_v40, %s3288_s5 }
 0x446   :  { %2157 = vrot.lane.b32.xlu0 %v1537_v40, %s3287_s29 }
 0x44a   :  { %2326 = vrot.lane.b32.xlu0 %v1537_v40, %s3289_s8 }
 0x47e   :  { %v3782_v42 = vpop.f32.mrb[4].mxu1  ;;  %v1724_v0 = vpop.f32.mrb[14].mxu0 }
 0x47f   :  { %v2804_v44 = vpop.f32.mrb[5].mxu1  ;;  %v2867_v61 = vpop.f32.mrb[15].mxu0 }
 0x4b4   :  { %v1988_v19 = vpop.permute.xlu0 %1987 }
 0x4b8   :  { %v2158_v23 = vpop.permute.xlu0 %2157 }
 0x4bc   :  { %v2327_v25 = vpop.permute.xlu0 %2326 }
 0x4e7   :  { %v3784_v45 = vpop.f32.mrb[6].mxu1 }
 0x4e8   :  { %v2814_v4 = vpop.f32.mrb[7].mxu1 }
 0x4eb   :  { %v3786_v55 = vpop.f32.mrb[8].mxu1 }
 0x4ec   :  { %v2824_v46 = vpop.f32.mrb[9].mxu1 }
 0x4ef   :  { %v3788_v49 = vpop.f32.mrb[10].mxu1 }
 0x4f0   :  { %v2834_v47 = vpop.f32.mrb[11].mxu1 }
 0x502   :  { %v1630_v50 = vpop.f32.mrb[12].mxu1 }
 0x503   :  { %v1725_v52 = vadd.f32 %v1724_v0, %v1630_v50  ;;  %v2856_v53 = vpop.f32.mrb[13].mxu1 }
 0x505   :  { %v1728_v54 = vadd.f32 %v1725_v52, %v3600_v41  ;;  %v1434_v41 = vld [vmem:[#allocation7 + $0x9] sm:$0x1] }
 0x506   :  { %v1743_v7 = vrot.slane %v1434_v41, 4 }
 0x507   :  { %1989 = vrot.lane.b32.xlu1 %v1728_v54, %s3288_s5  ;;  %2880 = vmatpush3.xpose.msk.msra.mxu0 %vm658_vm10, %v1728_v54 }
 0x508   :  { %2889 = vmatprep.subr.mxu0 %v3286_v1  ;;  %v1744_v15 = vsel %vm231_vm6, %v1743_v7, %v1742_v13 }
 0x509   :  { %v1746_v16 = vsel %vm234_vm7, %v1745_v10, %v1744_v15 }
 0x50a   :  { %2882 = vmatmul.mubr.msk.f32.vlgmr.msra.gmra.mrb[16].mxu0 %vm658_vm10, %v1537_v40  ;;  %v1748_v17 = vsel %vm237_vm8, %v1747_v12, %v1746_v16 }
 0x50b   :  { %2159 = vrot.lane.b32.xlu1 %v1728_v54, %s3287_s29  ;;  %2891 = vmatprep.mubr.msk.f32.mxu0 %vm3285_vm0, %v3286_v1  ;;  %v1750_v18 = vsel %vm240_vm9, %v1749_v14, %v1748_v17  ;;  %v3292_v14 = vmov 1966171168  }
 0x50c   :  { %2877 = vmatmul.mubr.msk.f32.vlgmr.msra.gmra.mrb[14].mxu1 %vm242_vm1, %v1750_v18  ;;  %v1350_v15 = vunpack.c.l.s4 %v3292_v14 }
 0x50d   :  { %2886 = vmatprep.mubr.msk.f32.mxu1 %vm3285_vm0, %v3286_v1 }
 0x50e   :  { %v1351_v17 = vunpack.c.0.s8 %v1350_v15 }
 0x50f   :  { %2328 = vrot.lane.b32.xlu1 %v1728_v54, %s3289_s8 }
 0x579   :  { %v1990_v2 = vpop.permute.xlu1 %1989 }
 0x57a   :  { %2890 = vmatpush3.xpose.msk.msra.mxu0 %vm658_vm10, %v1990_v2  ;;  %v3855_v2 = vsub.s32 %v1351_v17, %v3591_v34 }
 0x57b   :  { %2899 = vmatprep.subr.mxu0 %v3286_v1 }
 0x57d   :  { %v2160_v22 = vpop.permute.xlu1 %2159  ;;  %2892 = vmatmul.mubr.msk.f32.vlgmr.msra.gmra.mrb[18].mxu0 %vm658_vm10, %v1988_v19 }
 0x57e   :  { %2900 = vmatpush3.xpose.msk.msra.mxu0 %vm658_vm10, %v2160_v22  ;;  %2901 = vmatprep.mubr.msk.f32.mxu0 %vm3285_vm0, %v3286_v1 }
 0x57f   :  { %2909 = vmatprep.subr.mxu0 %v3286_v1 }
 0x581   :  { %v2329_v24 = vpop.permute.xlu1 %2328  ;;  %2902 = vmatmul.mubr.msk.f32.vlgmr.msra.gmra.mrb[20].mxu0 %vm658_vm10, %v2158_v23 }
 0x582   :  { %2910 = vmatpush3.xpose.msk.msra.mxu0 %vm658_vm10, %v2329_v24  ;;  %2911 = vmatprep.mubr.msk.f32.mxu0 %vm3285_vm0, %v3286_v1 }
 0x585   :  { %2912 = vmatmul.mubr.msk.f32.vlgmr.msra.gmra.mrb[22].mxu0 %vm658_vm10, %v2327_v25 }
 0x5dd   :  { %v1895_v6 = vpop.f32.mrb[16].mxu0 }
 0x5de   :  { %v1899_v26 = vmul.f32 0.35355338, %v1895_v6  ;;  %v2883_v27 = vpop.f32.mrb[17].mxu0 }
 0x5df   :  { %v1819_v44 = vpop.f32.mrb[14].mxu1 }
 0x5e0   :  { %v1900_v29 = vsel %vm658_vm10, %v1899_v26, -inf  ;;  %v1820_v0 = vadd.f32 %v3669_v5, %v1819_v44  ;;  %v2878_v61 = vpop.f32.mrb[15].mxu1 }
 0x5e1   :  { %1901 = vmax.xlane.f32.xlu1 %v1900_v29 }
 0x5e2   :  { %2885 = vmatpush3.msra.mxu1 %v1820_v0 }
 0x5e3   :  { %2894 = vmatprep.subr.mxu1 %v3286_v1 }
 0x650   :  { %v2061_v31 = vpop.f32.mrb[18].mxu0 }
 0x651   :  { %v2065_v28 = vmul.f32 0.35355338, %v2061_v31  ;;  %v2893_v8 = vpop.f32.mrb[19].mxu0 }
 0x653   :  { %v2066_v32 = vsel %vm658_vm10, %v2065_v28, -inf }
 0x654   :  { %2067 = vmax.xlane.f32.xlu0 %v2066_v32  ;;  %v2231_v33 = vpop.f32.mrb[20].mxu0 }
 0x655   :  { %v2235_v35 = vmul.f32 0.35355338, %v2231_v33  ;;  %v2903_v36 = vpop.f32.mrb[21].mxu0 }
 0x657   :  { %v2236_v37 = vsel %vm658_vm10, %v2235_v35, -inf }
 0x658   :  { %2237 = vmax.xlane.f32.xlu0 %v2236_v37  ;;  %v2400_v30 = vpop.f32.mrb[22].mxu0 }
 0x659   :  { %v2404_v38 = vmul.f32 0.35355338, %v2400_v30  ;;  %v2913_v39 = vpop.f32.mrb[23].mxu0 }
 0x65b   :  { %v2405_v21 = vsel %vm658_vm10, %v2404_v38, -inf }
 0x65c   :  { %2406 = vmax.xlane.f32.xlu1 %v2405_v21 }
 0x66e   :  { %v1902_v48 = vpop.xlane.xlu1 %1901 }
 0x66f   :  { %v1903_v40 = vsub.f32 %v1899_v26, %v1902_v48 }
 0x671   :  { %v1904_v43 = vmul.f32 1.442695, %v1903_v40 }
 0x673   :  { %3022 = vpow2.f32 %v1904_v43 }
 0x67d   :  { %v3023_v4 = vpop.eup %3022 }
 0x67e   :  { %v1906_v46 = vsel %vm658_vm10, %v3023_v4, 0.0 }
 0x67f   :  { %1907 = vadd.xlane.f32.xlu0 %v1906_v46 }
 0x6e1   :  { %v2068_v47 = vpop.xlane.xlu0 %2067 }
 0x6e2   :  { %v2069_v50 = vsub.f32 %v2065_v28, %v2068_v47 }
 0x6e4   :  { %v2070_v52 = vmul.f32 1.442695, %v2069_v50 }
 0x6e5   :  { %v2238_v53 = vpop.xlane.xlu0 %2237 }
 0x6e6   :  { %3024 = vpow2.f32 %v2070_v52  ;;  %v2239_v54 = vsub.f32 %v2235_v35, %v2238_v53 }
 0x6e8   :  { %v2240_v20 = vmul.f32 1.442695, %v2239_v54 }
 0x6e9   :  { %v2407_v59 = vpop.xlane.xlu1 %2406 }
 0x6ea   :  { %3026 = vpow2.f32 %v2240_v20  ;;  %v2408_v60 = vsub.f32 %v2404_v38, %v2407_v59 }
 0x6ec   :  { %v2409_v62 = vmul.f32 1.442695, %v2408_v60 }
 0x6f0   :  { %v3025_v56 = vpop.eup %3024 }
 0x6f1   :  { %v2072_v57 = vsel %vm658_vm10, %v3025_v56, 0.0 }
 0x6f2   :  { %2073 = vadd.xlane.f32.xlu1 %v2072_v57 }
 0x6f4   :  { %v3027_v5 = vpop.eup %3026 }
 0x6f5   :  { %v2242_v58 = vsel %vm658_vm10, %v3027_v5, 0.0 }
 0x6f6   :  { %2243 = vadd.xlane.f32.xlu0 %v2242_v58 }
 0x703   :  { %2250 = vrot.lane.b32.xlu1 %v1820_v0, %s3287_s29 }
 0x70c   :  { %2081 = vrot.lane.b32.xlu0 %v1820_v0, %s3288_s5  ;;  %v1908_v41 = vpop.xlane.xlu0 %1907 }
 0x70d   :  { %3028 = vrcp.f32 %v1908_v41 }
 0x70e   :  { %3030 = vpow2.f32 %v2409_v62 }
 0x710   :  { %1331 = vrot.lane.b32.xlu0 %v3784_v45, %s3279_s15 }
 0x714   :  { %1339 = vrot.lane.b32.xlu0 %v3788_v49, %s3290_s10 }
 0x717   :  { %v3029_v63 = vpop.eup %3028 }
 0x718   :  { %v1911_v51 = vmul.f32 %v3029_v63, %v3023_v4  ;;  %v3031_v3 = vpop.eup %3030 }
 0x719   :  { %v2411_v7 = vsel %vm658_vm10, %v3031_v3, 0.0 }
 0x71a   :  { %1913 = vst.msk [vmem:[#allocation17 + $0x20] sm:$0xff] %vm658_vm10, %v1911_v51  ;;  %2887 = vmatmul.mubr.msk.f32.vlgmr.msra.gmra.mrb[16].mxu1 %vm658_vm10, %v1911_v51 }
 0x71b   :  { %2896 = vmatprep.mubr.msk.f32.mxu1 %vm3285_vm0, %v3286_v1 }
 0x727   :  { %2412 = vadd.xlane.f32.xlu1 %v2411_v7 }
 0x738   :  { %2419 = vrot.lane.b32.xlu1 %v1820_v0, %s3289_s8 }
 0x73c   :  { %1335 = vrot.lane.b32.xlu1 %v3786_v55, %s3291_s4 }
 0x77f   :  { %v2074_v45 = vpop.xlane.xlu1 %2073 }
 0x780   :  { %3032 = vrcp.f32 %v2074_v45 }
 0x783   :  { %v2244_v49 = vpop.xlane.xlu0 %2243  ;;  %v2251_v12 = vpop.permute.xlu1 %2250 }
 0x784   :  { %3034 = vrcp.f32 %v2244_v49 }
 0x787   :  { %v2082_v9 = vpop.permute.xlu0 %2081 }
 0x788   :  { %2895 = vmatpush3.msra.mxu1 %v2082_v9 }
 0x789   :  { %2904 = vmatprep.subr.mxu1 %v3286_v1 }
 0x78a   :  { %v3033_v10 = vpop.eup %3032 }
 0x78b   :  { %v2077_v11 = vmul.f32 %v3033_v10, %v3025_v56  ;;  %v1332_v18 = vpop.permute.xlu0 %1331 }
 0x78c   :  { %v1342_v22 = vsel %vm658_vm10, %v3782_v42, %v1332_v18 }
 0x78d   :  { %2079 = vst.msk [vmem:[#allocation17 + $0x28] sm:$0xff] %vm658_vm10, %v2077_v11  ;;  %2897 = vmatmul.mubr.msk.f32.vlgmr.msra.gmra.mrb[18].mxu1 %vm658_vm10, %v2077_v11 }
 0x78e   :  { %v3035_v13 = vpop.eup %3034  ;;  %2905 = vmatpush3.msra.mxu1 %v2251_v12  ;;  %2906 = vmatprep.mubr.msk.f32.mxu1 %vm3285_vm0, %v3286_v1 }
 0x78f   :  { %v2247_v55 = vmul.f32 %v3035_v13, %v3027_v5  ;;  %2914 = vmatprep.subr.mxu1 %v3286_v1  ;;  %v1340_v24 = vpop.permute.xlu0 %1339 }
 0x791   :  { %2249 = vst.msk [vmem:[#allocation17 + $0x30] sm:$0xff] %vm658_vm10, %v2247_v55  ;;  %2907 = vmatmul.mubr.msk.f32.vlgmr.msra.gmra.mrb[20].mxu1 %vm658_vm10, %v2247_v55 }
 0x792   :  { %2916 = vmatprep.mubr.msk.f32.mxu1 %vm3285_vm0, %v3286_v1 }
 0x7b4   :  { %v2413_v16 = vpop.xlane.xlu1 %2412 }
 0x7b5   :  { %3036 = vrcp.f32 %v2413_v16 }
 0x7b8   :  { %v2420_v19 = vpop.permute.xlu1 %2419 }
 0x7b9   :  { %2915 = vmatpush3.msra.mxu1 %v2420_v19 }
 0x7bc   :  { %v1336_v23 = vpop.permute.xlu1 %1335 }
 0x7bd   :  { %v1344_v1 = vsel %vm1343_vm11, %v1342_v22, %v1336_v23 }
 0x7be   :  { %v1346_v25 = vsel %vm1345_vm12, %v1344_v1, %v1340_v24 }
 0x7bf   :  { %v3037_v6 = vpop.eup %3036  ;;  %v1348_v26 = vcombine.high %v1346_v25, %v1346_v25  ;;  %v1355_v27 = vrot.slane %v1346_v25, %v3855_v2 }
 0x7c0   :  { %v2416_v29 = vmul.f32 %v3037_v6, %v3031_v3 }
 0x7c1   :  { %v1362_v31 = vrot.slane %v1348_v26, %v3855_v2  ;;  %v1363_v34 = vcombine.high %v1355_v27, %v1355_v27  ;;  %v1371_v28 = vrot.slane %v1355_v27, %v3855_v2 }
 0x7c2   :  { %2418 = vst.msk [vmem:[#allocation17 + $0x38] sm:$0xff] %vm658_vm10, %v2416_v29  ;;  %2917 = vmatmul.mubr.msk.f32.vlgmr.msra.gmra.mrb[22].mxu1 %vm658_vm10, %v2416_v29 }
 0x7c3   :  { %v1364_v42 = vcombine.high %v1362_v31, %v1362_v31  ;;  %v1378_v8 = vrot.slane %v1362_v31, %v3855_v2  ;;  %v1385_v32 = vrot.slane %v1363_v34, %v3855_v2  ;;  %v1393_v33 = vcombine.high %v1371_v28, %v1371_v28  ;;  %1406 = vst.msk [vmem:[#allocation16] sm:$0x1] %vm1405_vm13, %v1371_v28 }
 0x7c5   :  { %v1392_v35 = vrot.slane %v1364_v42, %v3855_v2  ;;  %v1394_v36 = vcombine.high %v1378_v8, %v1378_v8  ;;  %v1395_v37 = vcombine.high %v1385_v32, %v1385_v32  ;;  %1407 = vst.msk [vmem:[#allocation16 + $0x2] sm:$0x1] %vm1405_vm13, %v1385_v32  ;;  %1408 = vst.msk [vmem:[#allocation16 + $0x4] sm:$0x1] %vm1405_vm13, %v1393_v33 }
 0x7c6   :  { %1410 = vst.msk [vmem:[#allocation16 + $0x8] sm:$0x1] %vm1405_vm13, %v1378_v8 }
 0x7c7   :  { %v1396_v30 = vcombine.high %v1392_v35, %v1392_v35  ;;  %1409 = vst.msk [vmem:[#allocation16 + $0x6] sm:$0x1] %vm1405_vm13, %v1395_v37  ;;  %1411 = vst.msk [vmem:[#allocation16 + $0xa] sm:$0x1] %vm1405_vm13, %v1392_v35 }
 0x7c8   :  { %1412 = vst.msk [vmem:[#allocation16 + $0xc] sm:$0x1] %vm1405_vm13, %v1394_v36 }
 0x7c9   :  { %1413 = vst.msk [vmem:[#allocation16 + $0xe] sm:$0x1] %vm1405_vm13, %v1396_v30 }
 0x7ed   :  { %v1983_v38 = vpop.f32.mrb[16].mxu1 }
 0x7ee   :  { %v2888_v39 = vpop.f32.mrb[17].mxu1 }
 0x860   :  { %v2153_v21 = vpop.f32.mrb[18].mxu1 }
 0x861   :  { %2496 = vrot.lane.b32.xlu1 %v2153_v21, %s3279_s15  ;;  %v2898_v48 = vpop.f32.mrb[19].mxu1 }
 0x864   :  { %v2322_v40 = vpop.f32.mrb[20].mxu1 }
 0x865   :  { %2500 = vrot.lane.b32.xlu0 %v2322_v40, %s3291_s4  ;;  %v2908_v43 = vpop.f32.mrb[21].mxu1 }
 0x895   :  { %v2491_v44 = vpop.f32.mrb[22].mxu1 }
 0x896   :  { %2504 = vrot.lane.b32.xlu1 %v2491_v44, %s3290_s10  ;;  %v2918_v0 = vpop.f32.mrb[23].mxu1 }
 0x897   :  { %3225 = shalt.err (!%p3222_p12)
}
 0x898   :  { %s3226_s2 = scalar_lea.hbm %s3940_s13, 1024 }
 0x899   :  { %p3227_p13 = scmp.ne.s32.totalorder %s3940_s13, %s3226_s2  ;;  %p3230_p0 = scmp.lt.u32.totalorder %s3226_s2, %s3940_s13 }
 0x89b   :  { %p3232_p1 = pnand %p3230_p0, %p3227_p13 }
 0x89d   :  { %3235 = shalt.err (!%p3232_p1)
}
 0x89e   :  { %2599 = dma.vmem_to_hbm [thread:$0]  %s2594_s3, 1024, %s3940_s13, [#allocation18], %s3278_s28, %s3278_s28, %s3279_s15  }
 0x89f   :  { %s3294_s13 = smov [#allocation16]  }
 0x8a0   :  { %s2581_s28 = sshll.u32 %s3294_s13, 4  ;;  %s2582_s28 = int_to_ptr.vmem [resolvable:$true] %s2581_s28 }
 0x8a1   :  { %s3236_s15 = scalar_lea.vmem %s2582_s28, 256  ;;  %p3241_p3 = scmp.lt.s32.totalorder %s2582_s28, %s2582_s28 }
 0x8a2   :  { %p3237_p2 = scmp.ne.s32.totalorder %s2582_s28, %s3236_s15  ;;  %p3242_p4 = scmp.lt.s32.totalorder %s3236_s15, %s3236_s15 }
 0x8a4   :  { %p3243_p5 = por %p3242_p4, %p3241_p3 }
 0x8a6   :  { %p3244_p6 = pnand %p3243_p5, %p3237_p2 }
 0x8d3   :  { %v2497_v61 = vpop.permute.xlu1 %2496 }
 0x8d4   :  { %v2507_v46 = vsel %vm658_vm10, %v1983_v38, %v2497_v61 }
 0x8d7   :  { %v2501_v4 = vpop.permute.xlu0 %2500 }
 0x8d8   :  { %v2508_v47 = vsel %vm1343_vm11, %v2507_v46, %v2501_v4 }
 0x908   :  { %v2505_v50 = vpop.permute.xlu1 %2504 }
 0x909   :  { %v2509_v52 = vsel %vm1345_vm12, %v2508_v47, %v2505_v50 }
 0x90a   :  { %v2511_v53 = vcombine.high %v2509_v52, %v2509_v52  ;;  %v2518_v54 = vrot.slane %v2509_v52, %v3855_v2 }
 0x90c   :  { %v2525_v20 = vrot.slane %v2511_v53, %v3855_v2  ;;  %v2526_v56 = vcombine.high %v2518_v54, %v2518_v54  ;;  %v2534_v57 = vrot.slane %v2518_v54, %v3855_v2 }
 0x90e   :  { %v2527_v5 = vcombine.high %v2525_v20, %v2525_v20  ;;  %v2541_v58 = vrot.slane %v2525_v20, %v3855_v2  ;;  %v2548_v41 = vrot.slane %v2526_v56, %v3855_v2  ;;  %v2556_v59 = vcombine.high %v2534_v57, %v2534_v57  ;;  %2568 = vst.msk [vmem:[#allocation16 + $0x1] sm:$0x1] %vm1405_vm13, %v2534_v57 }
 0x910   :  { %v2555_v60 = vrot.slane %v2527_v5, %v3855_v2  ;;  %v2557_v62 = vcombine.high %v2541_v58, %v2541_v58  ;;  %v2558_v63 = vcombine.high %v2548_v41, %v2548_v41  ;;  %2569 = vst.msk [vmem:[#allocation16 + $0x3] sm:$0x1] %vm1405_vm13, %v2548_v41  ;;  %2570 = vst.msk [vmem:[#allocation16 + $0x5] sm:$0x1] %vm1405_vm13, %v2556_v59 }
 0x911   :  { %2572 = vst.msk [vmem:[#allocation16 + $0x9] sm:$0x1] %vm1405_vm13, %v2541_v58 }
 0x912   :  { %v2559_v51 = vcombine.high %v2555_v60, %v2555_v60  ;;  %2571 = vst.msk [vmem:[#allocation16 + $0x7] sm:$0x1] %vm1405_vm13, %v2558_v63  ;;  %2573 = vst.msk [vmem:[#allocation16 + $0xb] sm:$0x1] %vm1405_vm13, %v2555_v60 }
 0x913   :  { %2574 = vst.msk [vmem:[#allocation16 + $0xd] sm:$0x1] %vm1405_vm13, %v2557_v62 }
 0x914   :  { %2575 = vst.msk [vmem:[#allocation16 + $0xf] sm:$0x1] %vm1405_vm13, %v2559_v51 }
 0x915   :  { %3247 = shalt.err (!%p3244_p6)
}
 0x916   :  { %s3248_s22 = scalar_lea.hbm %s3939_s12, 256 }
 0x917   :  { %p3249_p7 = scmp.ne.s32.totalorder %s3939_s12, %s3248_s22  ;;  %p3252_p8 = scmp.lt.u32.totalorder %s3248_s22, %s3939_s12 }
 0x919   :  { %p3254_p9 = pnand %p3252_p8, %p3249_p7 }
 0x91b   :  { %3257 = shalt.err (!%p3254_p9)
}
 0x91c   :  { %2587 = dma.vmem_to_hbm [thread:$0]  %s2582_s28, 256, %s3939_s12, [#allocation4], %s3274_s20, %s3274_s20, %s3275_s21  }
 0x91d   :  { %3268 = dma.done.wait [#allocation4], 256  }
 0x91e   :  { %3269 = vsyncadd [#allocation4], 4294967040 }
 0x91f   :  { %3270 = dma.done.wait [#allocation18], 1024  }
 0x920   :  { %3271 = vsyncadd [#allocation18], 4294966272 }
 0x921   :  { %2606 = vsyncpa [#allocation3], 1 }
 0x922   :  { %2607 = vsyncpa [#allocation6], 1 }
 0x923   :  { %2608 = vsyncpa [#allocation9], 1 }
 0x924   :  { %2609 = vsyncpa [#allocation12], 1 }
 0x925   :  { %2610 = vsyncpa [#allocation15], 1 }
 0x926   :  { %2611 = vsyncpa [#allocation4], 1 }
 0x927   :  { %2612 = vsyncpa [#allocation18], 1 }

</bundles_post_ra>
